<compile_context>
chip_gen: v6e
topology: v6e:2x2x1
jax: 0.10.0
libtpu: 0.0.40
codegen_flags: <defaults>
</compile_context>

<pallas_src>
import jax
import jax.numpy as jnp
from jax.experimental import pallas as pl
from jax.experimental.pallas import tpu as pltpu

# ----------------------------- model configuration (small, synthetic) -----------------
B = 2               # batch
M = 4               # num_channels (nvars)
L = 64              # seq_len
P = 8               # patch_dim
STRIDE = 8          # patch_stride (== patch_dim -> no replicate-pad in stem)
D = 32              # d_model[0]
FFN_RATIO = 1
DFF = D * FFN_RATIO          # per-group hidden width of ConvFFN1
H2 = M * FFN_RATIO           # per-group hidden width of ConvFFN2
KL = 13             # large_size[0]
KS = 5              # small_size[0]
NUM_BLOCKS = 2      # num_enc_layers[0]
NUM_CLASSES = 3
N = L // STRIDE     # num patches = 8
C = M * D           # flattened (variable, feature) channel count = 128
PAD = (KL - 1) // 2          # 6 ('same' padding of the large kernel)
OFF = (KL - KS) // 2         # 4 (small kernel offset inside the large kernel)
BN_EPS = 1e-5
REVIN_EPS = 1e-5

# Grid sizing: 1 step is optimal on single-TensorCore v5e/v6e (grid over batch would be
# a purely serial loop).  On v7x set GRID_STEPS = 2 so dimension_semantics="parallel"
# shards the batch across its two TensorCores (one batch item per core).
GRID_STEPS = 1
BPG = B // GRID_STEPS        # batch items per grid step
ROWS = BPG * N               # activation rows per grid step


# ----------------------------- fused Pallas kernel -------------------------------------
def _moderntcn_kernel(x_ref, wst_ref, bst_ref,
                      wl_ref, bdw_ref,
                      w1_ref, b1_ref, wf_ref, bfu_ref, w2_ref, b2_ref,
                      wh_ref, bh_ref, o_ref):
    f32 = jnp.float32

    # ---- stem: Conv1d(1, D, P, stride=P) + BatchNorm1d(D), as one block-diag matmul --
    # (bf16 weight is promoted to f32; f32 accumulation on the MXU)
    a = jnp.dot(x_ref[...], wst_ref[...], preferred_element_type=f32) + bst_ref[...]
    # a: (ROWS, C) with row index b*N + n and column index m*D + d

    zpad = jnp.zeros((N, C), f32)         # 8-row (tile-aligned) zero pad, built once

    for blk in range(NUM_BLOCKS):                                   # static unroll
        # ---- ReparamLargeKernelConv (small kernel merged into large at fold time) ---
        w = wl_ref[blk]                                             # (KL, C) f32
        wr = [w[k:k + 1, :] for k in range(KL)]                     # hoisted tap rows
        bias = bdw_ref[blk]                                         # (1, C) folded BNs
        rows = []
        for b in range(BPG):        # per batch item: window must not cross the batch
            ab = a[b * N:(b + 1) * N, :]                            # (N, C) aligned
            xp = jnp.concatenate([zpad, ab, zpad], axis=0)          # (3N, C) in-register
            # with an 8-row top pad (vs PAD=6), tap k reads window starting at k+2
            acc = xp[2:2 + N, :] * wr[0] + bias                     # first tap + bias
            for k in range(1, KL):
                acc = acc + xp[k + 2:k + 2 + N, :] * wr[k]
            rows.append(acc)
        y = rows[0] if BPG == 1 else jnp.concatenate(rows, axis=0)  # (ROWS, C)

        # ---- ConvFFN1-pw1 -> GELU -> fused(ConvFFN1-pw2 @ ConvFFN2-pw1) -> GELU ->
        #      ConvFFN2-pw2; all grouped 1x1 convs folded to dense 128x128 matmuls ----
        h = jax.nn.gelu(                       # TODO(synk): erf-exact GELU in PyTorch
            jnp.dot(y, w1_ref[blk], preferred_element_type=f32) + b1_ref[blk],
            approximate=True)
        h2 = jax.nn.gelu(
            jnp.dot(h, wf_ref[blk], preferred_element_type=f32) + bfu_ref[blk],
            approximate=True)
        a = a + jnp.dot(h2, w2_ref[blk], preferred_element_type=f32) + b2_ref[blk]

    # ---- classification head: GELU -> flatten -> Linear ------------------------------
    # out[b, k] = sum_{n,c} gelu(a)[b*N+n, c] * wh[k, n, c]  (+ bias)
    # done as elementwise multiply + full reduce per class: no serial MXU chain.
    g = jax.nn.gelu(a, approximate=True)                            # (ROWS, C)
    iota = jax.lax.broadcasted_iota(jnp.int32, (1, NUM_CLASSES), 1)
    for b in range(BPG):
        gb = g[b * N:(b + 1) * N, :]                                # (N, C)
        row = bh_ref[...]                                           # (1, NUM_CLASSES)
        for k in range(NUM_CLASSES):
            s = jnp.sum(gb * wh_ref[k], axis=1, keepdims=True)      # (N, 1) lane reduce
            s = jnp.sum(s, axis=0, keepdims=True)                   # (1, 1)
            row = row + jnp.where(iota == k, s, 0.0)
        o_ref[b:b + 1, :] = row


def _const_spec(arr):
    nd = arr.ndim
    return pl.BlockSpec(arr.shape, lambda s, _nd=nd: (0,) * _nd)


# ----------------------------- forward pass --------------------------------------------
@jax.jit
def moderntcn_forward(x, fp):
    # RevIN normalize (revin=True, affine=False, subtract_last=False); classification
    # never de-normalizes.  Population variance (unbiased=False), matching RevIN.
    mean = jnp.mean(x, axis=1, keepdims=True)
    var = jnp.var(x, axis=1, keepdims=True)
    xn = (x - mean) * jax.lax.rsqrt(var + REVIN_EPS)

    # patchify into the kernel layout: (B, L, M) -> (B*N, M*P), column index m*P + p,
    # so the stem block-diag matmul lands directly in the (rows, C = m*D + d) layout.
    xrow = xn.reshape(B, N, P, M).transpose(0, 1, 3, 2).reshape(B * N, M * P)

    ins = (xrow, fp["wstem"], fp["bstem"],
           fp["wl"], fp["bdw"],
           fp["w1"], fp["b1"], fp["wf"], fp["bfu"], fp["w2"], fp["b2"],
           fp["wh"], fp["bh"])

    in_specs = [pl.BlockSpec((ROWS, M * P), lambda s: (s, 0))]
    in_specs += [_const_spec(a) for a in ins[1:]]

    out = pl.pallas_call(
        _moderntcn_kernel,
        out_shape=jax.ShapeDtypeStruct((B, NUM_CLASSES), jnp.float32),
        grid=(GRID_STEPS,),
        in_specs=in_specs,
        out_specs=pl.BlockSpec((BPG, NUM_CLASSES), lambda s: (s, 0)),
        compiler_params=pltpu.CompilerParams(dimension_semantics=("parallel",)),
    )(*ins)
    return out


# ----------------------------- parameters (deterministic synthetic init) --------------
def make_params(key):
    """PyTorch-layout raw parameters + eval-mode BatchNorm statistics."""
    def nrm(k, shape, scale=0.05):
        return scale * jax.random.normal(k, shape, dtype=jnp.float32)

    def fresh_bn(n):
        return dict(gamma=jnp.ones((n,), jnp.float32), beta=jnp.zeros((n,), jnp.float32),
                    mean=jnp.zeros((n,), jnp.float32), var=jnp.ones((n,), jnp.float32))

    keys = iter(jax.random.split(key, 64))
    params = {
        "w_stem": nrm(next(keys), (P, D)),        # Conv1d(1, D, P) weight, (P, D) layout
        "b_stem": nrm(next(keys), (D,), 0.01),
        "bn_stem": fresh_bn(D),
        "blocks": [],
        # Linear(M*D*N, classes) weight, stored in PyTorch's (m, d, n) flatten order
        "w_head": nrm(next(keys), (M, D, N, NUM_CLASSES)),
        "b_head": nrm(next(keys), (NUM_CLASSES,), 0.01),
    }
    for _ in range(NUM_BLOCKS):
        blk = {
            "wl": nrm(next(keys), (C, KL)),       # depthwise large kernel (no conv bias)
            "ws": nrm(next(keys), (C, KS)),       # depthwise small kernel (no conv bias)
            "bn_l": fresh_bn(C), "bn_s": fresh_bn(C),
            "bn_blk": fresh_bn(D),                # Block's BatchNorm1d(d_model)
            # ConvFFN1: groups over variables M, mixes the D feature dim
            "w1_1": nrm(next(keys), (M, DFF, D)), "b1_1": nrm(next(keys), (M, DFF), 0.01),
            "w2_1": nrm(next(keys), (M, D, DFF)), "b2_1": nrm(next(keys), (M, D), 0.01),
            # ConvFFN2: groups over features D, mixes the M variable dim
            "w1_2": nrm(next(keys), (D, H2, M)), "b1_2": nrm(next(keys), (D, H2), 0.01),
            "w2_2": nrm(next(keys), (D, M, H2)), "b2_2": nrm(next(keys), (D, M), 0.01),
        }
        params["blocks"].append(blk)
    return params


def _bn_fold(bn, eps=BN_EPS):
    sc = bn["gamma"] * jax.lax.rsqrt(bn["var"] + eps)
    sh = bn["beta"] - bn["mean"] * sc
    return sc, sh


def fold_params(p):
    """Fold eval-mode BatchNorms, group structure, the small->large kernel re-param merge
    and the ConvFFN1-pw2 @ ConvFFN2-pw1 fusion into kernel-ready dense tensors."""
    bf16 = jnp.bfloat16

    # ---- stem: block-diagonal (M*P, C) matmul weight + folded BN ----
    sc, sh = _bn_fold(p["bn_stem"])                                     # (D,)
    wstem = jnp.kron(jnp.eye(M, dtype=jnp.float32), p["w_stem"] * sc[None, :])  # (M*P, C)
    bstem = jnp.tile(p["b_stem"] * sc + sh, M)[None, :]                 # (1, C)

    eyeM = jnp.eye(M, dtype=jnp.float32)
    eyeD = jnp.eye(D, dtype=jnp.float32)
    wl, bdw = [], []
    w1, b1, wfu, bfu, w2, b2 = [], [], [], [], [], []
    for blk in p["blocks"]:
        sl, tl = _bn_fold(blk["bn_l"])                                  # (C,)
        ss, ts = _bn_fold(blk["bn_s"])                                  # (C,)
        nsc_d, nsh_d = _bn_fold(blk["bn_blk"])                          # (D,)
        nsc = jnp.tile(nsc_d, M)                                        # (C,), index m*D+d
        nsh = jnp.tile(nsh_d, M)
        wl_f = (blk["wl"] * (sl * nsc)[:, None]).T                      # (KL, C)
        ws_f = (blk["ws"] * (ss * nsc)[:, None]).T                      # (KS, C)
        # structural re-parameterization: merge small kernel into the large one
        wl.append(wl_f.at[OFF:OFF + KS, :].add(ws_f))
        bdw.append(((tl + ts) * nsc + nsh)[None, :])                    # (1, C)

        # ConvFFN1 (groups = nvars): block-diagonal over m.
        w1f1 = jnp.einsum("mjd,mh->mdhj", blk["w1_1"], eyeM).reshape(C, M * DFF)
        b1f1 = blk["b1_1"].reshape(1, M * DFF)
        w2f1 = jnp.einsum("mdj,mh->mjhd", blk["w2_1"], eyeM).reshape(M * DFF, C)
        b2f1 = blk["b2_1"].reshape(1, C)

        # ConvFFN2 (groups = d_model): permuted block-diagonal — the
        # (B,M,D,N)<->(B,D,M,N) permutes of the PyTorch forward are baked in here.
        w1f2 = jnp.einsum("djm,de->mdje", blk["w1_2"], eyeD).reshape(C, H2 * D)
        b1f2 = blk["b1_2"].T.reshape(1, H2 * D)
        w2f2 = jnp.einsum("dmj,de->jdme", blk["w2_2"], eyeD).reshape(H2 * D, C)
        b2f2 = blk["b2_2"].T.reshape(1, C)

        # fuse ConvFFN1's second pointwise with ConvFFN2's first (no nonlinearity
        # between them; dropout = identity in eval mode)
        w1.append(w1f1); b1.append(b1f1)
        wfu.append(w2f1 @ w1f2); bfu.append(b2f1 @ w1f2 + b1f2)
        w2.append(w2f2); b2.append(b2f2)

    # head weight re-ordered from PyTorch's (m, d, n) flatten order to (class, n, m*D+d)
    wh = jnp.transpose(p["w_head"], (3, 2, 0, 1)).reshape(NUM_CLASSES, N, C)
    bh = p["b_head"][None, :]                                           # (1, NUM_CLASSES)

    stack = lambda xs: jnp.stack(xs, axis=0)
    return {
        # dense 128x128 weights in bf16 (halves weight DMA); biases / taps stay f32
        "wstem": wstem.astype(bf16), "bstem": bstem,
        "wl": stack(wl), "bdw": stack(bdw),
        "w1": stack(w1).astype(bf16), "b1": stack(b1),
        "wf": stack(wfu).astype(bf16), "bfu": stack(bfu),
        "w2": stack(w2).astype(bf16), "b2": stack(b2),
        "wh": wh, "bh": bh,
    }


if __name__ == "__main__":
    key = jax.random.PRNGKey(0)
    k_x, k_p = jax.random.split(key)
    x = jax.random.normal(k_x, (B, L, M), dtype=jnp.float32)

    params = make_params(k_p)
    folded = fold_params(params)          # pure-JAX one-time weight folding

    out = moderntcn_forward(x, folded)
    out = jax.block_until_ready(out)
    assert out.shape == (B, NUM_CLASSES), out.shape
    assert bool(jnp.all(jnp.isfinite(out)))
    print("KERNEL_OK")
</pallas_src>

<mosaic_0001>
module attributes {stable_mosaic.version = 11 : i64} {
  func.func @_moderntcn_kernel(%arg0: i32, %arg1: memref<16x32xf32, #tpu.memory_space<vmem>>, %arg2: memref<32x128xbf16, #tpu.memory_space<vmem>>, %arg3: memref<1x128xf32, #tpu.memory_space<vmem>>, %arg4: memref<2x13x128xf32, #tpu.memory_space<vmem>>, %arg5: memref<2x1x128xf32, #tpu.memory_space<vmem>>, %arg6: memref<2x128x128xbf16, #tpu.memory_space<vmem>>, %arg7: memref<2x1x128xf32, #tpu.memory_space<vmem>>, %arg8: memref<2x128x128xbf16, #tpu.memory_space<vmem>>, %arg9: memref<2x1x128xf32, #tpu.memory_space<vmem>>, %arg10: memref<2x128x128xbf16, #tpu.memory_space<vmem>>, %arg11: memref<2x1x128xf32, #tpu.memory_space<vmem>>, %arg12: memref<3x8x128xf32, #tpu.memory_space<vmem>>, %arg13: memref<1x3xf32, #tpu.memory_space<vmem>>, %arg14: memref<2x3xf32, #tpu.memory_space<vmem>>) attributes {dimension_semantics = [#tpu.dimension_semantics<parallel>], iteration_bounds = array<i64: 1>, scalar_prefetch = 0 : i64, scratch_operands = 0 : i64, tpu.core_type = #tpu.core_type<tc>, window_params = [{transform_indices = @transform_0, window_bounds = array<i64: 16, 32>}, {pipeline_mode = #tpu.pipeline_mode<synchronous>, transform_indices = @transform_1, window_bounds = array<i64: 32, 128>}, {pipeline_mode = #tpu.pipeline_mode<synchronous>, transform_indices = @transform_2, window_bounds = array<i64: 1, 128>}, {pipeline_mode = #tpu.pipeline_mode<synchronous>, transform_indices = @transform_3, window_bounds = array<i64: 2, 13, 128>}, {pipeline_mode = #tpu.pipeline_mode<synchronous>, transform_indices = @transform_4, window_bounds = array<i64: 2, 1, 128>}, {pipeline_mode = #tpu.pipeline_mode<synchronous>, transform_indices = @transform_5, window_bounds = array<i64: 2, 128, 128>}, {pipeline_mode = #tpu.pipeline_mode<synchronous>, transform_indices = @transform_6, window_bounds = array<i64: 2, 1, 128>}, {pipeline_mode = #tpu.pipeline_mode<synchronous>, transform_indices = @transform_7, window_bounds = array<i64: 2, 128, 128>}, {pipeline_mode = #tpu.pipeline_mode<synchronous>, transform_indices = @transform_8, window_bounds = array<i64: 2, 1, 128>}, {pipeline_mode = #tpu.pipeline_mode<synchronous>, transform_indices = @transform_9, window_bounds = array<i64: 2, 128, 128>}, {pipeline_mode = #tpu.pipeline_mode<synchronous>, transform_indices = @transform_10, window_bounds = array<i64: 2, 1, 128>}, {pipeline_mode = #tpu.pipeline_mode<synchronous>, transform_indices = @transform_11, window_bounds = array<i64: 3, 8, 128>}, {pipeline_mode = #tpu.pipeline_mode<synchronous>, transform_indices = @transform_12, window_bounds = array<i64: 1, 3>}, {transform_indices = @transform_13, window_bounds = array<i64: 2, 3>}]} {
    %c0 = arith.constant 0 : index
    %c0_0 = arith.constant 0 : index
    %0 = vector.load %arg1[%c0, %c0_0] : memref<16x32xf32, #tpu.memory_space<vmem>>, vector<16x32xf32>
    %c0_1 = arith.constant 0 : index
    %c0_2 = arith.constant 0 : index
    %1 = vector.load %arg2[%c0_1, %c0_2] : memref<32x128xbf16, #tpu.memory_space<vmem>>, vector<32x128xbf16>
    %cst = arith.constant dense<0.000000e+00> : vector<16x128xf32>
    %2 = tpu.matmul %0, %1, %cst {dimension_numbers = #tpu.dot_dimension_numbers<[1], [0], [0], [1], [0, 0, 1, 1], [], []>} : vector<16x32xf32>, vector<32x128xbf16>, vector<16x128xf32> -> vector<16x128xf32>
    %c0_3 = arith.constant 0 : index
    %c0_4 = arith.constant 0 : index
    %3 = vector.load %arg3[%c0_3, %c0_4] : memref<1x128xf32, #tpu.memory_space<vmem>>, vector<1x128xf32>
    %4 = vector.broadcast %3 : vector<1x128xf32> to vector<16x128xf32>
    %5 = arith.addf %2, %4 : vector<16x128xf32>
    %cst_5 = arith.constant 0.000000e+00 : f32
    %6 = vector.broadcast %cst_5 : f32 to vector<8x128xf32>
    %c0_6 = arith.constant 0 : index
    %c0_7 = arith.constant 0 : index
    %c0_8 = arith.constant 0 : index
    %7 = vector.load %arg4[%c0_6, %c0_7, %c0_8] : memref<2x13x128xf32, #tpu.memory_space<vmem>>, vector<1x13x128xf32>
    %8 = vector.shape_cast %7 : vector<1x13x128xf32> to vector<13x128xf32>
    %9 = vector.extract_strided_slice %8 {offsets = [0, 0], sizes = [1, 128], strides = [1, 1]} : vector<13x128xf32> to vector<1x128xf32>
    %10 = vector.extract_strided_slice %8 {offsets = [1, 0], sizes = [1, 128], strides = [1, 1]} : vector<13x128xf32> to vector<1x128xf32>
    %11 = vector.extract_strided_slice %8 {offsets = [2, 0], sizes = [1, 128], strides = [1, 1]} : vector<13x128xf32> to vector<1x128xf32>
    %12 = vector.extract_strided_slice %8 {offsets = [3, 0], sizes = [1, 128], strides = [1, 1]} : vector<13x128xf32> to vector<1x128xf32>
    %13 = vector.extract_strided_slice %8 {offsets = [4, 0], sizes = [1, 128], strides = [1, 1]} : vector<13x128xf32> to vector<1x128xf32>
    %14 = vector.extract_strided_slice %8 {offsets = [5, 0], sizes = [1, 128], strides = [1, 1]} : vector<13x128xf32> to vector<1x128xf32>
    %15 = vector.extract_strided_slice %8 {offsets = [6, 0], sizes = [1, 128], strides = [1, 1]} : vector<13x128xf32> to vector<1x128xf32>
    %16 = vector.extract_strided_slice %8 {offsets = [7, 0], sizes = [1, 128], strides = [1, 1]} : vector<13x128xf32> to vector<1x128xf32>
    %17 = vector.extract_strided_slice %8 {offsets = [8, 0], sizes = [1, 128], strides = [1, 1]} : vector<13x128xf32> to vector<1x128xf32>
    %18 = vector.extract_strided_slice %8 {offsets = [9, 0], sizes = [1, 128], strides = [1, 1]} : vector<13x128xf32> to vector<1x128xf32>
    %19 = vector.extract_strided_slice %8 {offsets = [10, 0], sizes = [1, 128], strides = [1, 1]} : vector<13x128xf32> to vector<1x128xf32>
    %20 = vector.extract_strided_slice %8 {offsets = [11, 0], sizes = [1, 128], strides = [1, 1]} : vector<13x128xf32> to vector<1x128xf32>
    %21 = vector.extract_strided_slice %8 {offsets = [12, 0], sizes = [1, 128], strides = [1, 1]} : vector<13x128xf32> to vector<1x128xf32>
    %c0_9 = arith.constant 0 : index
    %c0_10 = arith.constant 0 : index
    %c0_11 = arith.constant 0 : index
    %22 = vector.load %arg5[%c0_9, %c0_10, %c0_11] : memref<2x1x128xf32, #tpu.memory_space<vmem>>, vector<1x1x128xf32>
    %23 = vector.shape_cast %22 : vector<1x1x128xf32> to vector<1x128xf32>
    %24 = vector.extract_strided_slice %5 {offsets = [0, 0], sizes = [8, 128], strides = [1, 1]} : vector<16x128xf32> to vector<8x128xf32>
    %25 = tpu.concatenate %6, %24, %6 in 0 : vector<8x128xf32>, vector<8x128xf32>, vector<8x128xf32> -> vector<24x128xf32>
    %26 = vector.extract_strided_slice %25 {offsets = [2, 0], sizes = [8, 128], strides = [1, 1]} : vector<24x128xf32> to vector<8x128xf32>
    %27 = vector.broadcast %9 : vector<1x128xf32> to vector<8x128xf32>
    %28 = arith.mulf %26, %27 : vector<8x128xf32>
    %29 = vector.broadcast %23 : vector<1x128xf32> to vector<8x128xf32>
    %30 = arith.addf %28, %29 : vector<8x128xf32>
    %31 = vector.extract_strided_slice %25 {offsets = [3, 0], sizes = [8, 128], strides = [1, 1]} : vector<24x128xf32> to vector<8x128xf32>
    %32 = vector.broadcast %10 : vector<1x128xf32> to vector<8x128xf32>
    %33 = arith.mulf %31, %32 : vector<8x128xf32>
    %34 = arith.addf %30, %33 : vector<8x128xf32>
    %35 = vector.extract_strided_slice %25 {offsets = [4, 0], sizes = [8, 128], strides = [1, 1]} : vector<24x128xf32> to vector<8x128xf32>
    %36 = vector.broadcast %11 : vector<1x128xf32> to vector<8x128xf32>
    %37 = arith.mulf %35, %36 : vector<8x128xf32>
    %38 = arith.addf %34, %37 : vector<8x128xf32>
    %39 = vector.extract_strided_slice %25 {offsets = [5, 0], sizes = [8, 128], strides = [1, 1]} : vector<24x128xf32> to vector<8x128xf32>
    %40 = vector.broadcast %12 : vector<1x128xf32> to vector<8x128xf32>
    %41 = arith.mulf %39, %40 : vector<8x128xf32>
    %42 = arith.addf %38, %41 : vector<8x128xf32>
    %43 = vector.extract_strided_slice %25 {offsets = [6, 0], sizes = [8, 128], strides = [1, 1]} : vector<24x128xf32> to vector<8x128xf32>
    %44 = vector.broadcast %13 : vector<1x128xf32> to vector<8x128xf32>
    %45 = arith.mulf %43, %44 : vector<8x128xf32>
    %46 = arith.addf %42, %45 : vector<8x128xf32>
    %47 = vector.extract_strided_slice %25 {offsets = [7, 0], sizes = [8, 128], strides = [1, 1]} : vector<24x128xf32> to vector<8x128xf32>
    %48 = vector.broadcast %14 : vector<1x128xf32> to vector<8x128xf32>
    %49 = arith.mulf %47, %48 : vector<8x128xf32>
    %50 = arith.addf %46, %49 : vector<8x128xf32>
    %51 = vector.extract_strided_slice %25 {offsets = [8, 0], sizes = [8, 128], strides = [1, 1]} : vector<24x128xf32> to vector<8x128xf32>
    %52 = vector.broadcast %15 : vector<1x128xf32> to vector<8x128xf32>
    %53 = arith.mulf %51, %52 : vector<8x128xf32>
    %54 = arith.addf %50, %53 : vector<8x128xf32>
    %55 = vector.extract_strided_slice %25 {offsets = [9, 0], sizes = [8, 128], strides = [1, 1]} : vector<24x128xf32> to vector<8x128xf32>
    %56 = vector.broadcast %16 : vector<1x128xf32> to vector<8x128xf32>
    %57 = arith.mulf %55, %56 : vector<8x128xf32>
    %58 = arith.addf %54, %57 : vector<8x128xf32>
    %59 = vector.extract_strided_slice %25 {offsets = [10, 0], sizes = [8, 128], strides = [1, 1]} : vector<24x128xf32> to vector<8x128xf32>
    %60 = vector.broadcast %17 : vector<1x128xf32> to vector<8x128xf32>
    %61 = arith.mulf %59, %60 : vector<8x128xf32>
    %62 = arith.addf %58, %61 : vector<8x128xf32>
    %63 = vector.extract_strided_slice %25 {offsets = [11, 0], sizes = [8, 128], strides = [1, 1]} : vector<24x128xf32> to vector<8x128xf32>
    %64 = vector.broadcast %18 : vector<1x128xf32> to vector<8x128xf32>
    %65 = arith.mulf %63, %64 : vector<8x128xf32>
    %66 = arith.addf %62, %65 : vector<8x128xf32>
    %67 = vector.extract_strided_slice %25 {offsets = [12, 0], sizes = [8, 128], strides = [1, 1]} : vector<24x128xf32> to vector<8x128xf32>
    %68 = vector.broadcast %19 : vector<1x128xf32> to vector<8x128xf32>
    %69 = arith.mulf %67, %68 : vector<8x128xf32>
    %70 = arith.addf %66, %69 : vector<8x128xf32>
    %71 = vector.extract_strided_slice %25 {offsets = [13, 0], sizes = [8, 128], strides = [1, 1]} : vector<24x128xf32> to vector<8x128xf32>
    %72 = vector.broadcast %20 : vector<1x128xf32> to vector<8x128xf32>
    %73 = arith.mulf %71, %72 : vector<8x128xf32>
    %74 = arith.addf %70, %73 : vector<8x128xf32>
    %75 = vector.extract_strided_slice %25 {offsets = [14, 0], sizes = [8, 128], strides = [1, 1]} : vector<24x128xf32> to vector<8x128xf32>
    %76 = vector.broadcast %21 : vector<1x128xf32> to vector<8x128xf32>
    %77 = arith.mulf %75, %76 : vector<8x128xf32>
    %78 = arith.addf %74, %77 : vector<8x128xf32>
    %79 = vector.extract_strided_slice %5 {offsets = [8, 0], sizes = [8, 128], strides = [1, 1]} : vector<16x128xf32> to vector<8x128xf32>
    %80 = tpu.concatenate %6, %79, %6 in 0 : vector<8x128xf32>, vector<8x128xf32>, vector<8x128xf32> -> vector<24x128xf32>
    %81 = vector.extract_strided_slice %80 {offsets = [2, 0], sizes = [8, 128], strides = [1, 1]} : vector<24x128xf32> to vector<8x128xf32>
    %82 = vector.broadcast %9 : vector<1x128xf32> to vector<8x128xf32>
    %83 = arith.mulf %81, %82 : vector<8x128xf32>
    %84 = vector.broadcast %23 : vector<1x128xf32> to vector<8x128xf32>
    %85 = arith.addf %83, %84 : vector<8x128xf32>
    %86 = vector.extract_strided_slice %80 {offsets = [3, 0], sizes = [8, 128], strides = [1, 1]} : vector<24x128xf32> to vector<8x128xf32>
    %87 = vector.broadcast %10 : vector<1x128xf32> to vector<8x128xf32>
    %88 = arith.mulf %86, %87 : vector<8x128xf32>
    %89 = arith.addf %85, %88 : vector<8x128xf32>
    %90 = vector.extract_strided_slice %80 {offsets = [4, 0], sizes = [8, 128], strides = [1, 1]} : vector<24x128xf32> to vector<8x128xf32>
    %91 = vector.broadcast %11 : vector<1x128xf32> to vector<8x128xf32>
    %92 = arith.mulf %90, %91 : vector<8x128xf32>
    %93 = arith.addf %89, %92 : vector<8x128xf32>
    %94 = vector.extract_strided_slice %80 {offsets = [5, 0], sizes = [8, 128], strides = [1, 1]} : vector<24x128xf32> to vector<8x128xf32>
    %95 = vector.broadcast %12 : vector<1x128xf32> to vector<8x128xf32>
    %96 = arith.mulf %94, %95 : vector<8x128xf32>
    %97 = arith.addf %93, %96 : vector<8x128xf32>
    %98 = vector.extract_strided_slice %80 {offsets = [6, 0], sizes = [8, 128], strides = [1, 1]} : vector<24x128xf32> to vector<8x128xf32>
    %99 = vector.broadcast %13 : vector<1x128xf32> to vector<8x128xf32>
    %100 = arith.mulf %98, %99 : vector<8x128xf32>
    %101 = arith.addf %97, %100 : vector<8x128xf32>
    %102 = vector.extract_strided_slice %80 {offsets = [7, 0], sizes = [8, 128], strides = [1, 1]} : vector<24x128xf32> to vector<8x128xf32>
    %103 = vector.broadcast %14 : vector<1x128xf32> to vector<8x128xf32>
    %104 = arith.mulf %102, %103 : vector<8x128xf32>
    %105 = arith.addf %101, %104 : vector<8x128xf32>
    %106 = vector.extract_strided_slice %80 {offsets = [8, 0], sizes = [8, 128], strides = [1, 1]} : vector<24x128xf32> to vector<8x128xf32>
    %107 = vector.broadcast %15 : vector<1x128xf32> to vector<8x128xf32>
    %108 = arith.mulf %106, %107 : vector<8x128xf32>
    %109 = arith.addf %105, %108 : vector<8x128xf32>
    %110 = vector.extract_strided_slice %80 {offsets = [9, 0], sizes = [8, 128], strides = [1, 1]} : vector<24x128xf32> to vector<8x128xf32>
    %111 = vector.broadcast %16 : vector<1x128xf32> to vector<8x128xf32>
    %112 = arith.mulf %110, %111 : vector<8x128xf32>
    %113 = arith.addf %109, %112 : vector<8x128xf32>
    %114 = vector.extract_strided_slice %80 {offsets = [10, 0], sizes = [8, 128], strides = [1, 1]} : vector<24x128xf32> to vector<8x128xf32>
    %115 = vector.broadcast %17 : vector<1x128xf32> to vector<8x128xf32>
    %116 = arith.mulf %114, %115 : vector<8x128xf32>
    %117 = arith.addf %113, %116 : vector<8x128xf32>
    %118 = vector.extract_strided_slice %80 {offsets = [11, 0], sizes = [8, 128], strides = [1, 1]} : vector<24x128xf32> to vector<8x128xf32>
    %119 = vector.broadcast %18 : vector<1x128xf32> to vector<8x128xf32>
    %120 = arith.mulf %118, %119 : vector<8x128xf32>
    %121 = arith.addf %117, %120 : vector<8x128xf32>
    %122 = vector.extract_strided_slice %80 {offsets = [12, 0], sizes = [8, 128], strides = [1, 1]} : vector<24x128xf32> to vector<8x128xf32>
    %123 = vector.broadcast %19 : vector<1x128xf32> to vector<8x128xf32>
    %124 = arith.mulf %122, %123 : vector<8x128xf32>
    %125 = arith.addf %121, %124 : vector<8x128xf32>
    %126 = vector.extract_strided_slice %80 {offsets = [13, 0], sizes = [8, 128], strides = [1, 1]} : vector<24x128xf32> to vector<8x128xf32>
    %127 = vector.broadcast %20 : vector<1x128xf32> to vector<8x128xf32>
    %128 = arith.mulf %126, %127 : vector<8x128xf32>
    %129 = arith.addf %125, %128 : vector<8x128xf32>
    %130 = vector.extract_strided_slice %80 {offsets = [14, 0], sizes = [8, 128], strides = [1, 1]} : vector<24x128xf32> to vector<8x128xf32>
    %131 = vector.broadcast %21 : vector<1x128xf32> to vector<8x128xf32>
    %132 = arith.mulf %130, %131 : vector<8x128xf32>
    %133 = arith.addf %129, %132 : vector<8x128xf32>
    %134 = tpu.concatenate %78, %133 in 0 : vector<8x128xf32>, vector<8x128xf32> -> vector<16x128xf32>
    %c0_12 = arith.constant 0 : index
    %c0_13 = arith.constant 0 : index
    %c0_14 = arith.constant 0 : index
    %135 = vector.load %arg6[%c0_12, %c0_13, %c0_14] : memref<2x128x128xbf16, #tpu.memory_space<vmem>>, vector<1x128x128xbf16>
    %136 = vector.shape_cast %135 : vector<1x128x128xbf16> to vector<128x128xbf16>
    %cst_15 = arith.constant dense<0.000000e+00> : vector<16x128xf32>
    %137 = tpu.matmul %134, %136, %cst_15 {dimension_numbers = #tpu.dot_dimension_numbers<[1], [0], [0], [1], [0, 0, 1, 1], [], []>} : vector<16x128xf32>, vector<128x128xbf16>, vector<16x128xf32> -> vector<16x128xf32>
    %c0_16 = arith.constant 0 : index
    %c0_17 = arith.constant 0 : index
    %c0_18 = arith.constant 0 : index
    %138 = vector.load %arg7[%c0_16, %c0_17, %c0_18] : memref<2x1x128xf32, #tpu.memory_space<vmem>>, vector<1x1x128xf32>
    %139 = vector.shape_cast %138 : vector<1x1x128xf32> to vector<1x128xf32>
    %140 = vector.broadcast %139 : vector<1x128xf32> to vector<16x128xf32>
    %141 = arith.addf %137, %140 : vector<16x128xf32>
    %142 = arith.mulf %141, %141 : vector<16x128xf32>
    %143 = arith.mulf %141, %142 : vector<16x128xf32>
    %cst_19 = arith.constant 4.471500e-02 : f32
    %144 = vector.broadcast %cst_19 : f32 to vector<16x128xf32>
    %145 = arith.mulf %144, %143 : vector<16x128xf32>
    %146 = arith.addf %141, %145 : vector<16x128xf32>
    %cst_20 = arith.constant 0.797884583 : f32
    %147 = vector.broadcast %cst_20 : f32 to vector<16x128xf32>
    %148 = arith.mulf %147, %146 : vector<16x128xf32>
    %149 = math.tanh %148 : vector<16x128xf32>
    %cst_21 = arith.constant 1.000000e+00 : f32
    %150 = vector.broadcast %cst_21 : f32 to vector<16x128xf32>
    %151 = arith.addf %150, %149 : vector<16x128xf32>
    %cst_22 = arith.constant 5.000000e-01 : f32
    %152 = vector.broadcast %cst_22 : f32 to vector<16x128xf32>
    %153 = arith.mulf %152, %151 : vector<16x128xf32>
    %154 = arith.mulf %141, %153 : vector<16x128xf32>
    %c0_23 = arith.constant 0 : index
    %c0_24 = arith.constant 0 : index
    %c0_25 = arith.constant 0 : index
    %155 = vector.load %arg8[%c0_23, %c0_24, %c0_25] : memref<2x128x128xbf16, #tpu.memory_space<vmem>>, vector<1x128x128xbf16>
    %156 = vector.shape_cast %155 : vector<1x128x128xbf16> to vector<128x128xbf16>
    %cst_26 = arith.constant dense<0.000000e+00> : vector<16x128xf32>
    %157 = tpu.matmul %154, %156, %cst_26 {dimension_numbers = #tpu.dot_dimension_numbers<[1], [0], [0], [1], [0, 0, 1, 1], [], []>} : vector<16x128xf32>, vector<128x128xbf16>, vector<16x128xf32> -> vector<16x128xf32>
    %c0_27 = arith.constant 0 : index
    %c0_28 = arith.constant 0 : index
    %c0_29 = arith.constant 0 : index
    %158 = vector.load %arg9[%c0_27, %c0_28, %c0_29] : memref<2x1x128xf32, #tpu.memory_space<vmem>>, vector<1x1x128xf32>
    %159 = vector.shape_cast %158 : vector<1x1x128xf32> to vector<1x128xf32>
    %160 = vector.broadcast %159 : vector<1x128xf32> to vector<16x128xf32>
    %161 = arith.addf %157, %160 : vector<16x128xf32>
    %162 = arith.mulf %161, %161 : vector<16x128xf32>
    %163 = arith.mulf %161, %162 : vector<16x128xf32>
    %cst_30 = arith.constant 4.471500e-02 : f32
    %164 = vector.broadcast %cst_30 : f32 to vector<16x128xf32>
    %165 = arith.mulf %164, %163 : vector<16x128xf32>
    %166 = arith.addf %161, %165 : vector<16x128xf32>
    %cst_31 = arith.constant 0.797884583 : f32
    %167 = vector.broadcast %cst_31 : f32 to vector<16x128xf32>
    %168 = arith.mulf %167, %166 : vector<16x128xf32>
    %169 = math.tanh %168 : vector<16x128xf32>
    %cst_32 = arith.constant 1.000000e+00 : f32
    %170 = vector.broadcast %cst_32 : f32 to vector<16x128xf32>
    %171 = arith.addf %170, %169 : vector<16x128xf32>
    %cst_33 = arith.constant 5.000000e-01 : f32
    %172 = vector.broadcast %cst_33 : f32 to vector<16x128xf32>
    %173 = arith.mulf %172, %171 : vector<16x128xf32>
    %174 = arith.mulf %161, %173 : vector<16x128xf32>
    %c0_34 = arith.constant 0 : index
    %c0_35 = arith.constant 0 : index
    %c0_36 = arith.constant 0 : index
    %175 = vector.load %arg10[%c0_34, %c0_35, %c0_36] : memref<2x128x128xbf16, #tpu.memory_space<vmem>>, vector<1x128x128xbf16>
    %176 = vector.shape_cast %175 : vector<1x128x128xbf16> to vector<128x128xbf16>
    %cst_37 = arith.constant dense<0.000000e+00> : vector<16x128xf32>
    %177 = tpu.matmul %174, %176, %cst_37 {dimension_numbers = #tpu.dot_dimension_numbers<[1], [0], [0], [1], [0, 0, 1, 1], [], []>} : vector<16x128xf32>, vector<128x128xbf16>, vector<16x128xf32> -> vector<16x128xf32>
    %178 = arith.addf %5, %177 : vector<16x128xf32>
    %c0_38 = arith.constant 0 : index
    %c0_39 = arith.constant 0 : index
    %c0_40 = arith.constant 0 : index
    %179 = vector.load %arg11[%c0_38, %c0_39, %c0_40] : memref<2x1x128xf32, #tpu.memory_space<vmem>>, vector<1x1x128xf32>
    %180 = vector.shape_cast %179 : vector<1x1x128xf32> to vector<1x128xf32>
    %181 = vector.broadcast %180 : vector<1x128xf32> to vector<16x128xf32>
    %182 = arith.addf %178, %181 : vector<16x128xf32>
    %c1 = arith.constant 1 : index
    %c0_41 = arith.constant 0 : index
    %c0_42 = arith.constant 0 : index
    %183 = vector.load %arg4[%c1, %c0_41, %c0_42] : memref<2x13x128xf32, #tpu.memory_space<vmem>>, vector<1x13x128xf32>
    %184 = vector.shape_cast %183 : vector<1x13x128xf32> to vector<13x128xf32>
    %185 = vector.extract_strided_slice %184 {offsets = [0, 0], sizes = [1, 128], strides = [1, 1]} : vector<13x128xf32> to vector<1x128xf32>
    %186 = vector.extract_strided_slice %184 {offsets = [1, 0], sizes = [1, 128], strides = [1, 1]} : vector<13x128xf32> to vector<1x128xf32>
    %187 = vector.extract_strided_slice %184 {offsets = [2, 0], sizes = [1, 128], strides = [1, 1]} : vector<13x128xf32> to vector<1x128xf32>
    %188 = vector.extract_strided_slice %184 {offsets = [3, 0], sizes = [1, 128], strides = [1, 1]} : vector<13x128xf32> to vector<1x128xf32>
    %189 = vector.extract_strided_slice %184 {offsets = [4, 0], sizes = [1, 128], strides = [1, 1]} : vector<13x128xf32> to vector<1x128xf32>
    %190 = vector.extract_strided_slice %184 {offsets = [5, 0], sizes = [1, 128], strides = [1, 1]} : vector<13x128xf32> to vector<1x128xf32>
    %191 = vector.extract_strided_slice %184 {offsets = [6, 0], sizes = [1, 128], strides = [1, 1]} : vector<13x128xf32> to vector<1x128xf32>
    %192 = vector.extract_strided_slice %184 {offsets = [7, 0], sizes = [1, 128], strides = [1, 1]} : vector<13x128xf32> to vector<1x128xf32>
    %193 = vector.extract_strided_slice %184 {offsets = [8, 0], sizes = [1, 128], strides = [1, 1]} : vector<13x128xf32> to vector<1x128xf32>
    %194 = vector.extract_strided_slice %184 {offsets = [9, 0], sizes = [1, 128], strides = [1, 1]} : vector<13x128xf32> to vector<1x128xf32>
    %195 = vector.extract_strided_slice %184 {offsets = [10, 0], sizes = [1, 128], strides = [1, 1]} : vector<13x128xf32> to vector<1x128xf32>
    %196 = vector.extract_strided_slice %184 {offsets = [11, 0], sizes = [1, 128], strides = [1, 1]} : vector<13x128xf32> to vector<1x128xf32>
    %197 = vector.extract_strided_slice %184 {offsets = [12, 0], sizes = [1, 128], strides = [1, 1]} : vector<13x128xf32> to vector<1x128xf32>
    %c1_43 = arith.constant 1 : index
    %c0_44 = arith.constant 0 : index
    %c0_45 = arith.constant 0 : index
    %198 = vector.load %arg5[%c1_43, %c0_44, %c0_45] : memref<2x1x128xf32, #tpu.memory_space<vmem>>, vector<1x1x128xf32>
    %199 = vector.shape_cast %198 : vector<1x1x128xf32> to vector<1x128xf32>
    %200 = vector.extract_strided_slice %182 {offsets = [0, 0], sizes = [8, 128], strides = [1, 1]} : vector<16x128xf32> to vector<8x128xf32>
    %201 = tpu.concatenate %6, %200, %6 in 0 : vector<8x128xf32>, vector<8x128xf32>, vector<8x128xf32> -> vector<24x128xf32>
    %202 = vector.extract_strided_slice %201 {offsets = [2, 0], sizes = [8, 128], strides = [1, 1]} : vector<24x128xf32> to vector<8x128xf32>
    %203 = vector.broadcast %185 : vector<1x128xf32> to vector<8x128xf32>
    %204 = arith.mulf %202, %203 : vector<8x128xf32>
    %205 = vector.broadcast %199 : vector<1x128xf32> to vector<8x128xf32>
    %206 = arith.addf %204, %205 : vector<8x128xf32>
    %207 = vector.extract_strided_slice %201 {offsets = [3, 0], sizes = [8, 128], strides = [1, 1]} : vector<24x128xf32> to vector<8x128xf32>
    %208 = vector.broadcast %186 : vector<1x128xf32> to vector<8x128xf32>
    %209 = arith.mulf %207, %208 : vector<8x128xf32>
    %210 = arith.addf %206, %209 : vector<8x128xf32>
    %211 = vector.extract_strided_slice %201 {offsets = [4, 0], sizes = [8, 128], strides = [1, 1]} : vector<24x128xf32> to vector<8x128xf32>
    %212 = vector.broadcast %187 : vector<1x128xf32> to vector<8x128xf32>
    %213 = arith.mulf %211, %212 : vector<8x128xf32>
    %214 = arith.addf %210, %213 : vector<8x128xf32>
    %215 = vector.extract_strided_slice %201 {offsets = [5, 0], sizes = [8, 128], strides = [1, 1]} : vector<24x128xf32> to vector<8x128xf32>
    %216 = vector.broadcast %188 : vector<1x128xf32> to vector<8x128xf32>
    %217 = arith.mulf %215, %216 : vector<8x128xf32>
    %218 = arith.addf %214, %217 : vector<8x128xf32>
    %219 = vector.extract_strided_slice %201 {offsets = [6, 0], sizes = [8, 128], strides = [1, 1]} : vector<24x128xf32> to vector<8x128xf32>
    %220 = vector.broadcast %189 : vector<1x128xf32> to vector<8x128xf32>
    %221 = arith.mulf %219, %220 : vector<8x128xf32>
    %222 = arith.addf %218, %221 : vector<8x128xf32>
    %223 = vector.extract_strided_slice %201 {offsets = [7, 0], sizes = [8, 128], strides = [1, 1]} : vector<24x128xf32> to vector<8x128xf32>
    %224 = vector.broadcast %190 : vector<1x128xf32> to vector<8x128xf32>
    %225 = arith.mulf %223, %224 : vector<8x128xf32>
    %226 = arith.addf %222, %225 : vector<8x128xf32>
    %227 = vector.extract_strided_slice %201 {offsets = [8, 0], sizes = [8, 128], strides = [1, 1]} : vector<24x128xf32> to vector<8x128xf32>
    %228 = vector.broadcast %191 : vector<1x128xf32> to vector<8x128xf32>
    %229 = arith.mulf %227, %228 : vector<8x128xf32>
    %230 = arith.addf %226, %229 : vector<8x128xf32>
    %231 = vector.extract_strided_slice %201 {offsets = [9, 0], sizes = [8, 128], strides = [1, 1]} : vector<24x128xf32> to vector<8x128xf32>
    %232 = vector.broadcast %192 : vector<1x128xf32> to vector<8x128xf32>
    %233 = arith.mulf %231, %232 : vector<8x128xf32>
    %234 = arith.addf %230, %233 : vector<8x128xf32>
    %235 = vector.extract_strided_slice %201 {offsets = [10, 0], sizes = [8, 128], strides = [1, 1]} : vector<24x128xf32> to vector<8x128xf32>
    %236 = vector.broadcast %193 : vector<1x128xf32> to vector<8x128xf32>
    %237 = arith.mulf %235, %236 : vector<8x128xf32>
    %238 = arith.addf %234, %237 : vector<8x128xf32>
    %239 = vector.extract_strided_slice %201 {offsets = [11, 0], sizes = [8, 128], strides = [1, 1]} : vector<24x128xf32> to vector<8x128xf32>
    %240 = vector.broadcast %194 : vector<1x128xf32> to vector<8x128xf32>
    %241 = arith.mulf %239, %240 : vector<8x128xf32>
    %242 = arith.addf %238, %241 : vector<8x128xf32>
    %243 = vector.extract_strided_slice %201 {offsets = [12, 0], sizes = [8, 128], strides = [1, 1]} : vector<24x128xf32> to vector<8x128xf32>
    %244 = vector.broadcast %195 : vector<1x128xf32> to vector<8x128xf32>
    %245 = arith.mulf %243, %244 : vector<8x128xf32>
    %246 = arith.addf %242, %245 : vector<8x128xf32>
    %247 = vector.extract_strided_slice %201 {offsets = [13, 0], sizes = [8, 128], strides = [1, 1]} : vector<24x128xf32> to vector<8x128xf32>
    %248 = vector.broadcast %196 : vector<1x128xf32> to vector<8x128xf32>
    %249 = arith.mulf %247, %248 : vector<8x128xf32>
    %250 = arith.addf %246, %249 : vector<8x128xf32>
    %251 = vector.extract_strided_slice %201 {offsets = [14, 0], sizes = [8, 128], strides = [1, 1]} : vector<24x128xf32> to vector<8x128xf32>
    %252 = vector.broadcast %197 : vector<1x128xf32> to vector<8x128xf32>
    %253 = arith.mulf %251, %252 : vector<8x128xf32>
    %254 = arith.addf %250, %253 : vector<8x128xf32>
    %255 = vector.extract_strided_slice %182 {offsets = [8, 0], sizes = [8, 128], strides = [1, 1]} : vector<16x128xf32> to vector<8x128xf32>
    %256 = tpu.concatenate %6, %255, %6 in 0 : vector<8x128xf32>, vector<8x128xf32>, vector<8x128xf32> -> vector<24x128xf32>
    %257 = vector.extract_strided_slice %256 {offsets = [2, 0], sizes = [8, 128], strides = [1, 1]} : vector<24x128xf32> to vector<8x128xf32>
    %258 = vector.broadcast %185 : vector<1x128xf32> to vector<8x128xf32>
    %259 = arith.mulf %257, %258 : vector<8x128xf32>
    %260 = vector.broadcast %199 : vector<1x128xf32> to vector<8x128xf32>
    %261 = arith.addf %259, %260 : vector<8x128xf32>
    %262 = vector.extract_strided_slice %256 {offsets = [3, 0], sizes = [8, 128], strides = [1, 1]} : vector<24x128xf32> to vector<8x128xf32>
    %263 = vector.broadcast %186 : vector<1x128xf32> to vector<8x128xf32>
    %264 = arith.mulf %262, %263 : vector<8x128xf32>
    %265 = arith.addf %261, %264 : vector<8x128xf32>
    %266 = vector.extract_strided_slice %256 {offsets = [4, 0], sizes = [8, 128], strides = [1, 1]} : vector<24x128xf32> to vector<8x128xf32>
    %267 = vector.broadcast %187 : vector<1x128xf32> to vector<8x128xf32>
    %268 = arith.mulf %266, %267 : vector<8x128xf32>
    %269 = arith.addf %265, %268 : vector<8x128xf32>
    %270 = vector.extract_strided_slice %256 {offsets = [5, 0], sizes = [8, 128], strides = [1, 1]} : vector<24x128xf32> to vector<8x128xf32>
    %271 = vector.broadcast %188 : vector<1x128xf32> to vector<8x128xf32>
    %272 = arith.mulf %270, %271 : vector<8x128xf32>
    %273 = arith.addf %269, %272 : vector<8x128xf32>
    %274 = vector.extract_strided_slice %256 {offsets = [6, 0], sizes = [8, 128], strides = [1, 1]} : vector<24x128xf32> to vector<8x128xf32>
    %275 = vector.broadcast %189 : vector<1x128xf32> to vector<8x128xf32>
    %276 = arith.mulf %274, %275 : vector<8x128xf32>
    %277 = arith.addf %273, %276 : vector<8x128xf32>
    %278 = vector.extract_strided_slice %256 {offsets = [7, 0], sizes = [8, 128], strides = [1, 1]} : vector<24x128xf32> to vector<8x128xf32>
    %279 = vector.broadcast %190 : vector<1x128xf32> to vector<8x128xf32>
    %280 = arith.mulf %278, %279 : vector<8x128xf32>
    %281 = arith.addf %277, %280 : vector<8x128xf32>
    %282 = vector.extract_strided_slice %256 {offsets = [8, 0], sizes = [8, 128], strides = [1, 1]} : vector<24x128xf32> to vector<8x128xf32>
    %283 = vector.broadcast %191 : vector<1x128xf32> to vector<8x128xf32>
    %284 = arith.mulf %282, %283 : vector<8x128xf32>
    %285 = arith.addf %281, %284 : vector<8x128xf32>
    %286 = vector.extract_strided_slice %256 {offsets = [9, 0], sizes = [8, 128], strides = [1, 1]} : vector<24x128xf32> to vector<8x128xf32>
    %287 = vector.broadcast %192 : vector<1x128xf32> to vector<8x128xf32>
    %288 = arith.mulf %286, %287 : vector<8x128xf32>
    %289 = arith.addf %285, %288 : vector<8x128xf32>
    %290 = vector.extract_strided_slice %256 {offsets = [10, 0], sizes = [8, 128], strides = [1, 1]} : vector<24x128xf32> to vector<8x128xf32>
    %291 = vector.broadcast %193 : vector<1x128xf32> to vector<8x128xf32>
    %292 = arith.mulf %290, %291 : vector<8x128xf32>
    %293 = arith.addf %289, %292 : vector<8x128xf32>
    %294 = vector.extract_strided_slice %256 {offsets = [11, 0], sizes = [8, 128], strides = [1, 1]} : vector<24x128xf32> to vector<8x128xf32>
    %295 = vector.broadcast %194 : vector<1x128xf32> to vector<8x128xf32>
    %296 = arith.mulf %294, %295 : vector<8x128xf32>
    %297 = arith.addf %293, %296 : vector<8x128xf32>
    %298 = vector.extract_strided_slice %256 {offsets = [12, 0], sizes = [8, 128], strides = [1, 1]} : vector<24x128xf32> to vector<8x128xf32>
    %299 = vector.broadcast %195 : vector<1x128xf32> to vector<8x128xf32>
    %300 = arith.mulf %298, %299 : vector<8x128xf32>
    %301 = arith.addf %297, %300 : vector<8x128xf32>
    %302 = vector.extract_strided_slice %256 {offsets = [13, 0], sizes = [8, 128], strides = [1, 1]} : vector<24x128xf32> to vector<8x128xf32>
    %303 = vector.broadcast %196 : vector<1x128xf32> to vector<8x128xf32>
    %304 = arith.mulf %302, %303 : vector<8x128xf32>
    %305 = arith.addf %301, %304 : vector<8x128xf32>
    %306 = vector.extract_strided_slice %256 {offsets = [14, 0], sizes = [8, 128], strides = [1, 1]} : vector<24x128xf32> to vector<8x128xf32>
    %307 = vector.broadcast %197 : vector<1x128xf32> to vector<8x128xf32>
    %308 = arith.mulf %306, %307 : vector<8x128xf32>
    %309 = arith.addf %305, %308 : vector<8x128xf32>
    %310 = tpu.concatenate %254, %309 in 0 : vector<8x128xf32>, vector<8x128xf32> -> vector<16x128xf32>
    %c1_46 = arith.constant 1 : index
    %c0_47 = arith.constant 0 : index
    %c0_48 = arith.constant 0 : index
    %311 = vector.load %arg6[%c1_46, %c0_47, %c0_48] : memref<2x128x128xbf16, #tpu.memory_space<vmem>>, vector<1x128x128xbf16>
    %312 = vector.shape_cast %311 : vector<1x128x128xbf16> to vector<128x128xbf16>
    %cst_49 = arith.constant dense<0.000000e+00> : vector<16x128xf32>
    %313 = tpu.matmul %310, %312, %cst_49 {dimension_numbers = #tpu.dot_dimension_numbers<[1], [0], [0], [1], [0, 0, 1, 1], [], []>} : vector<16x128xf32>, vector<128x128xbf16>, vector<16x128xf32> -> vector<16x128xf32>
    %c1_50 = arith.constant 1 : index
    %c0_51 = arith.constant 0 : index
    %c0_52 = arith.constant 0 : index
    %314 = vector.load %arg7[%c1_50, %c0_51, %c0_52] : memref<2x1x128xf32, #tpu.memory_space<vmem>>, vector<1x1x128xf32>
    %315 = vector.shape_cast %314 : vector<1x1x128xf32> to vector<1x128xf32>
    %316 = vector.broadcast %315 : vector<1x128xf32> to vector<16x128xf32>
    %317 = arith.addf %313, %316 : vector<16x128xf32>
    %318 = arith.mulf %317, %317 : vector<16x128xf32>
    %319 = arith.mulf %317, %318 : vector<16x128xf32>
    %cst_53 = arith.constant 4.471500e-02 : f32
    %320 = vector.broadcast %cst_53 : f32 to vector<16x128xf32>
    %321 = arith.mulf %320, %319 : vector<16x128xf32>
    %322 = arith.addf %317, %321 : vector<16x128xf32>
    %cst_54 = arith.constant 0.797884583 : f32
    %323 = vector.broadcast %cst_54 : f32 to vector<16x128xf32>
    %324 = arith.mulf %323, %322 : vector<16x128xf32>
    %325 = math.tanh %324 : vector<16x128xf32>
    %cst_55 = arith.constant 1.000000e+00 : f32
    %326 = vector.broadcast %cst_55 : f32 to vector<16x128xf32>
    %327 = arith.addf %326, %325 : vector<16x128xf32>
    %cst_56 = arith.constant 5.000000e-01 : f32
    %328 = vector.broadcast %cst_56 : f32 to vector<16x128xf32>
    %329 = arith.mulf %328, %327 : vector<16x128xf32>
    %330 = arith.mulf %317, %329 : vector<16x128xf32>
    %c1_57 = arith.constant 1 : index
    %c0_58 = arith.constant 0 : index
    %c0_59 = arith.constant 0 : index
    %331 = vector.load %arg8[%c1_57, %c0_58, %c0_59] : memref<2x128x128xbf16, #tpu.memory_space<vmem>>, vector<1x128x128xbf16>
    %332 = vector.shape_cast %331 : vector<1x128x128xbf16> to vector<128x128xbf16>
    %cst_60 = arith.constant dense<0.000000e+00> : vector<16x128xf32>
    %333 = tpu.matmul %330, %332, %cst_60 {dimension_numbers = #tpu.dot_dimension_numbers<[1], [0], [0], [1], [0, 0, 1, 1], [], []>} : vector<16x128xf32>, vector<128x128xbf16>, vector<16x128xf32> -> vector<16x128xf32>
    %c1_61 = arith.constant 1 : index
    %c0_62 = arith.constant 0 : index
    %c0_63 = arith.constant 0 : index
    %334 = vector.load %arg9[%c1_61, %c0_62, %c0_63] : memref<2x1x128xf32, #tpu.memory_space<vmem>>, vector<1x1x128xf32>
    %335 = vector.shape_cast %334 : vector<1x1x128xf32> to vector<1x128xf32>
    %336 = vector.broadcast %335 : vector<1x128xf32> to vector<16x128xf32>
    %337 = arith.addf %333, %336 : vector<16x128xf32>
    %338 = arith.mulf %337, %337 : vector<16x128xf32>
    %339 = arith.mulf %337, %338 : vector<16x128xf32>
    %cst_64 = arith.constant 4.471500e-02 : f32
    %340 = vector.broadcast %cst_64 : f32 to vector<16x128xf32>
    %341 = arith.mulf %340, %339 : vector<16x128xf32>
    %342 = arith.addf %337, %341 : vector<16x128xf32>
    %cst_65 = arith.constant 0.797884583 : f32
    %343 = vector.broadcast %cst_65 : f32 to vector<16x128xf32>
    %344 = arith.mulf %343, %342 : vector<16x128xf32>
    %345 = math.tanh %344 : vector<16x128xf32>
    %cst_66 = arith.constant 1.000000e+00 : f32
    %346 = vector.broadcast %cst_66 : f32 to vector<16x128xf32>
    %347 = arith.addf %346, %345 : vector<16x128xf32>
    %cst_67 = arith.constant 5.000000e-01 : f32
    %348 = vector.broadcast %cst_67 : f32 to vector<16x128xf32>
    %349 = arith.mulf %348, %347 : vector<16x128xf32>
    %350 = arith.mulf %337, %349 : vector<16x128xf32>
    %c1_68 = arith.constant 1 : index
    %c0_69 = arith.constant 0 : index
    %c0_70 = arith.constant 0 : index
    %351 = vector.load %arg10[%c1_68, %c0_69, %c0_70] : memref<2x128x128xbf16, #tpu.memory_space<vmem>>, vector<1x128x128xbf16>
    %352 = vector.shape_cast %351 : vector<1x128x128xbf16> to vector<128x128xbf16>
    %cst_71 = arith.constant dense<0.000000e+00> : vector<16x128xf32>
    %353 = tpu.matmul %350, %352, %cst_71 {dimension_numbers = #tpu.dot_dimension_numbers<[1], [0], [0], [1], [0, 0, 1, 1], [], []>} : vector<16x128xf32>, vector<128x128xbf16>, vector<16x128xf32> -> vector<16x128xf32>
    %354 = arith.addf %182, %353 : vector<16x128xf32>
    %c1_72 = arith.constant 1 : index
    %c0_73 = arith.constant 0 : index
    %c0_74 = arith.constant 0 : index
    %355 = vector.load %arg11[%c1_72, %c0_73, %c0_74] : memref<2x1x128xf32, #tpu.memory_space<vmem>>, vector<1x1x128xf32>
    %356 = vector.shape_cast %355 : vector<1x1x128xf32> to vector<1x128xf32>
    %357 = vector.broadcast %356 : vector<1x128xf32> to vector<16x128xf32>
    %358 = arith.addf %354, %357 : vector<16x128xf32>
    %359 = arith.mulf %358, %358 : vector<16x128xf32>
    %360 = arith.mulf %358, %359 : vector<16x128xf32>
    %cst_75 = arith.constant 4.471500e-02 : f32
    %361 = vector.broadcast %cst_75 : f32 to vector<16x128xf32>
    %362 = arith.mulf %361, %360 : vector<16x128xf32>
    %363 = arith.addf %358, %362 : vector<16x128xf32>
    %cst_76 = arith.constant 0.797884583 : f32
    %364 = vector.broadcast %cst_76 : f32 to vector<16x128xf32>
    %365 = arith.mulf %364, %363 : vector<16x128xf32>
    %366 = math.tanh %365 : vector<16x128xf32>
    %cst_77 = arith.constant 1.000000e+00 : f32
    %367 = vector.broadcast %cst_77 : f32 to vector<16x128xf32>
    %368 = arith.addf %367, %366 : vector<16x128xf32>
    %cst_78 = arith.constant 5.000000e-01 : f32
    %369 = vector.broadcast %cst_78 : f32 to vector<16x128xf32>
    %370 = arith.mulf %369, %368 : vector<16x128xf32>
    %371 = arith.mulf %358, %370 : vector<16x128xf32>
    %372 = tpu.iota {dimensions = array<i32: 1>} : vector<1x3xi32>
    %373 = vector.extract_strided_slice %371 {offsets = [0, 0], sizes = [8, 128], strides = [1, 1]} : vector<16x128xf32> to vector<8x128xf32>
    %c0_79 = arith.constant 0 : index
    %c0_80 = arith.constant 0 : index
    %374 = vector.load %arg13[%c0_79, %c0_80] : memref<1x3xf32, #tpu.memory_space<vmem>>, vector<1x3xf32>
    %c0_81 = arith.constant 0 : index
    %c0_82 = arith.constant 0 : index
    %c0_83 = arith.constant 0 : index
    %375 = vector.load %arg12[%c0_81, %c0_82, %c0_83] : memref<3x8x128xf32, #tpu.memory_space<vmem>>, vector<1x8x128xf32>
    %376 = vector.shape_cast %375 : vector<1x8x128xf32> to vector<8x128xf32>
    %377 = arith.mulf %373, %376 : vector<8x128xf32>
    %cst_84 = arith.constant dense<0.000000e+00> : vector<8xf32>
    %378 = vector.multi_reduction <add>, %377, %cst_84 [1] : vector<8x128xf32> to vector<8xf32>
    %379 = vector.shape_cast %378 : vector<8xf32> to vector<8x1xf32>
    %cst_85 = arith.constant dense<0.000000e+00> : vector<1xf32>
    %380 = vector.multi_reduction <add>, %379, %cst_85 [0] : vector<8x1xf32> to vector<1xf32>
    %381 = vector.shape_cast %380 : vector<1xf32> to vector<1x1xf32>
    %c0_i32 = arith.constant 0 : i32
    %382 = vector.broadcast %c0_i32 : i32 to vector<1x3xi32>
    %383 = arith.cmpi eq, %372, %382 : vector<1x3xi32>
    %cst_86 = arith.constant 0.000000e+00 : f32
    %384 = vector.shape_cast %381 : vector<1x1xf32> to vector<1x1xf32>
    %385 = vector.broadcast %384 : vector<1x1xf32> to vector<1x3xf32>
    %386 = vector.broadcast %cst_86 : f32 to vector<1x3xf32>
    %387 = arith.select %383, %385, %386 : vector<1x3xi1>, vector<1x3xf32>
    %388 = arith.addf %374, %387 : vector<1x3xf32>
    %c1_87 = arith.constant 1 : index
    %c0_88 = arith.constant 0 : index
    %c0_89 = arith.constant 0 : index
    %389 = vector.load %arg12[%c1_87, %c0_88, %c0_89] : memref<3x8x128xf32, #tpu.memory_space<vmem>>, vector<1x8x128xf32>
    %390 = vector.shape_cast %389 : vector<1x8x128xf32> to vector<8x128xf32>
    %391 = arith.mulf %373, %390 : vector<8x128xf32>
    %cst_90 = arith.constant dense<0.000000e+00> : vector<8xf32>
    %392 = vector.multi_reduction <add>, %391, %cst_90 [1] : vector<8x128xf32> to vector<8xf32>
    %393 = vector.shape_cast %392 : vector<8xf32> to vector<8x1xf32>
    %cst_91 = arith.constant dense<0.000000e+00> : vector<1xf32>
    %394 = vector.multi_reduction <add>, %393, %cst_91 [0] : vector<8x1xf32> to vector<1xf32>
    %395 = vector.shape_cast %394 : vector<1xf32> to vector<1x1xf32>
    %c1_i32 = arith.constant 1 : i32
    %396 = vector.broadcast %c1_i32 : i32 to vector<1x3xi32>
    %397 = arith.cmpi eq, %372, %396 : vector<1x3xi32>
    %cst_92 = arith.constant 0.000000e+00 : f32
    %398 = vector.shape_cast %395 : vector<1x1xf32> to vector<1x1xf32>
    %399 = vector.broadcast %398 : vector<1x1xf32> to vector<1x3xf32>
    %400 = vector.broadcast %cst_92 : f32 to vector<1x3xf32>
    %401 = arith.select %397, %399, %400 : vector<1x3xi1>, vector<1x3xf32>
    %402 = arith.addf %388, %401 : vector<1x3xf32>
    %c2 = arith.constant 2 : index
    %c0_93 = arith.constant 0 : index
    %c0_94 = arith.constant 0 : index
    %403 = vector.load %arg12[%c2, %c0_93, %c0_94] : memref<3x8x128xf32, #tpu.memory_space<vmem>>, vector<1x8x128xf32>
    %404 = vector.shape_cast %403 : vector<1x8x128xf32> to vector<8x128xf32>
    %405 = arith.mulf %373, %404 : vector<8x128xf32>
    %cst_95 = arith.constant dense<0.000000e+00> : vector<8xf32>
    %406 = vector.multi_reduction <add>, %405, %cst_95 [1] : vector<8x128xf32> to vector<8xf32>
    %407 = vector.shape_cast %406 : vector<8xf32> to vector<8x1xf32>
    %cst_96 = arith.constant dense<0.000000e+00> : vector<1xf32>
    %408 = vector.multi_reduction <add>, %407, %cst_96 [0] : vector<8x1xf32> to vector<1xf32>
    %409 = vector.shape_cast %408 : vector<1xf32> to vector<1x1xf32>
    %c2_i32 = arith.constant 2 : i32
    %410 = vector.broadcast %c2_i32 : i32 to vector<1x3xi32>
    %411 = arith.cmpi eq, %372, %410 : vector<1x3xi32>
    %cst_97 = arith.constant 0.000000e+00 : f32
    %412 = vector.shape_cast %409 : vector<1x1xf32> to vector<1x1xf32>
    %413 = vector.broadcast %412 : vector<1x1xf32> to vector<1x3xf32>
    %414 = vector.broadcast %cst_97 : f32 to vector<1x3xf32>
    %415 = arith.select %411, %413, %414 : vector<1x3xi1>, vector<1x3xf32>
    %416 = arith.addf %402, %415 : vector<1x3xf32>
    %c0_98 = arith.constant 0 : index
    %c0_99 = arith.constant 0 : index
    %417 = vector.load %arg14[%c0_98, %c0_99] : memref<2x3xf32, #tpu.memory_space<vmem>>, vector<1x3xf32>
    tpu.vector_store %arg14[%c0_98, %c0_99], %416 {strides = array<i32>} : memref<2x3xf32, #tpu.memory_space<vmem>>, vector<1x3xf32>,
    %418 = vector.extract_strided_slice %371 {offsets = [8, 0], sizes = [8, 128], strides = [1, 1]} : vector<16x128xf32> to vector<8x128xf32>
    %c0_100 = arith.constant 0 : index
    %c0_101 = arith.constant 0 : index
    %419 = vector.load %arg13[%c0_100, %c0_101] : memref<1x3xf32, #tpu.memory_space<vmem>>, vector<1x3xf32>
    %c0_102 = arith.constant 0 : index
    %c0_103 = arith.constant 0 : index
    %c0_104 = arith.constant 0 : index
    %420 = vector.load %arg12[%c0_102, %c0_103, %c0_104] : memref<3x8x128xf32, #tpu.memory_space<vmem>>, vector<1x8x128xf32>
    %421 = vector.shape_cast %420 : vector<1x8x128xf32> to vector<8x128xf32>
    %422 = arith.mulf %418, %421 : vector<8x128xf32>
    %cst_105 = arith.constant dense<0.000000e+00> : vector<8xf32>
    %423 = vector.multi_reduction <add>, %422, %cst_105 [1] : vector<8x128xf32> to vector<8xf32>
    %424 = vector.shape_cast %423 : vector<8xf32> to vector<8x1xf32>
    %cst_106 = arith.constant dense<0.000000e+00> : vector<1xf32>
    %425 = vector.multi_reduction <add>, %424, %cst_106 [0] : vector<8x1xf32> to vector<1xf32>
    %426 = vector.shape_cast %425 : vector<1xf32> to vector<1x1xf32>
    %c0_i32_107 = arith.constant 0 : i32
    %427 = vector.broadcast %c0_i32_107 : i32 to vector<1x3xi32>
    %428 = arith.cmpi eq, %372, %427 : vector<1x3xi32>
    %cst_108 = arith.constant 0.000000e+00 : f32
    %429 = vector.shape_cast %426 : vector<1x1xf32> to vector<1x1xf32>
    %430 = vector.broadcast %429 : vector<1x1xf32> to vector<1x3xf32>
    %431 = vector.broadcast %cst_108 : f32 to vector<1x3xf32>
    %432 = arith.select %428, %430, %431 : vector<1x3xi1>, vector<1x3xf32>
    %433 = arith.addf %419, %432 : vector<1x3xf32>
    %c1_109 = arith.constant 1 : index
    %c0_110 = arith.constant 0 : index
    %c0_111 = arith.constant 0 : index
    %434 = vector.load %arg12[%c1_109, %c0_110, %c0_111] : memref<3x8x128xf32, #tpu.memory_space<vmem>>, vector<1x8x128xf32>
    %435 = vector.shape_cast %434 : vector<1x8x128xf32> to vector<8x128xf32>
    %436 = arith.mulf %418, %435 : vector<8x128xf32>
    %cst_112 = arith.constant dense<0.000000e+00> : vector<8xf32>
    %437 = vector.multi_reduction <add>, %436, %cst_112 [1] : vector<8x128xf32> to vector<8xf32>
    %438 = vector.shape_cast %437 : vector<8xf32> to vector<8x1xf32>
    %cst_113 = arith.constant dense<0.000000e+00> : vector<1xf32>
    %439 = vector.multi_reduction <add>, %438, %cst_113 [0] : vector<8x1xf32> to vector<1xf32>
    %440 = vector.shape_cast %439 : vector<1xf32> to vector<1x1xf32>
    %c1_i32_114 = arith.constant 1 : i32
    %441 = vector.broadcast %c1_i32_114 : i32 to vector<1x3xi32>
    %442 = arith.cmpi eq, %372, %441 : vector<1x3xi32>
    %cst_115 = arith.constant 0.000000e+00 : f32
    %443 = vector.shape_cast %440 : vector<1x1xf32> to vector<1x1xf32>
    %444 = vector.broadcast %443 : vector<1x1xf32> to vector<1x3xf32>
    %445 = vector.broadcast %cst_115 : f32 to vector<1x3xf32>
    %446 = arith.select %442, %444, %445 : vector<1x3xi1>, vector<1x3xf32>
    %447 = arith.addf %433, %446 : vector<1x3xf32>
    %c2_116 = arith.constant 2 : index
    %c0_117 = arith.constant 0 : index
    %c0_118 = arith.constant 0 : index
    %448 = vector.load %arg12[%c2_116, %c0_117, %c0_118] : memref<3x8x128xf32, #tpu.memory_space<vmem>>, vector<1x8x128xf32>
    %449 = vector.shape_cast %448 : vector<1x8x128xf32> to vector<8x128xf32>
    %450 = arith.mulf %418, %449 : vector<8x128xf32>
    %cst_119 = arith.constant dense<0.000000e+00> : vector<8xf32>
    %451 = vector.multi_reduction <add>, %450, %cst_119 [1] : vector<8x128xf32> to vector<8xf32>
    %452 = vector.shape_cast %451 : vector<8xf32> to vector<8x1xf32>
    %cst_120 = arith.constant dense<0.000000e+00> : vector<1xf32>
    %453 = vector.multi_reduction <add>, %452, %cst_120 [0] : vector<8x1xf32> to vector<1xf32>
    %454 = vector.shape_cast %453 : vector<1xf32> to vector<1x1xf32>
    %c2_i32_121 = arith.constant 2 : i32
    %455 = vector.broadcast %c2_i32_121 : i32 to vector<1x3xi32>
    %456 = arith.cmpi eq, %372, %455 : vector<1x3xi32>
    %cst_122 = arith.constant 0.000000e+00 : f32
    %457 = vector.shape_cast %454 : vector<1x1xf32> to vector<1x1xf32>
    %458 = vector.broadcast %457 : vector<1x1xf32> to vector<1x3xf32>
    %459 = vector.broadcast %cst_122 : f32 to vector<1x3xf32>
    %460 = arith.select %456, %458, %459 : vector<1x3xi1>, vector<1x3xf32>
    %461 = arith.addf %447, %460 : vector<1x3xf32>
    %c1_123 = arith.constant 1 : index
    %c0_124 = arith.constant 0 : index
    %462 = vector.load %arg14[%c1_123, %c0_124] : memref<2x3xf32, #tpu.memory_space<vmem>>, vector<1x3xf32>
    tpu.vector_store %arg14[%c1_123, %c0_124], %461 {strides = array<i32>} : memref<2x3xf32, #tpu.memory_space<vmem>>, vector<1x3xf32>,
    return
  }
  func.func @transform_0(%arg0: i32) -> (i32, i32) {
    %c0_i32 = arith.constant 0 : i32
    %c0_i32_0 = arith.constant 0 : i32
    return %arg0, %c0_i32 : i32, i32
  }
  func.func @transform_1(%arg0: i32) -> (i32, i32) {
    %c0_i32 = arith.constant 0 : i32
    %c0_i32_0 = arith.constant 0 : i32
    %c0_i32_1 = arith.constant 0 : i32
    return %c0_i32, %c0_i32_0 : i32, i32
  }
  func.func @transform_2(%arg0: i32) -> (i32, i32) {
    %c0_i32 = arith.constant 0 : i32
    %c0_i32_0 = arith.constant 0 : i32
    %c0_i32_1 = arith.constant 0 : i32
    return %c0_i32, %c0_i32_0 : i32, i32
  }
  func.func @transform_3(%arg0: i32) -> (i32, i32, i32) {
    %c0_i32 = arith.constant 0 : i32
    %c0_i32_0 = arith.constant 0 : i32
    %c0_i32_1 = arith.constant 0 : i32
    %c0_i32_2 = arith.constant 0 : i32
    return %c0_i32, %c0_i32_0, %c0_i32_1 : i32, i32, i32
  }
  func.func @transform_4(%arg0: i32) -> (i32, i32, i32) {
    %c0_i32 = arith.constant 0 : i32
    %c0_i32_0 = arith.constant 0 : i32
    %c0_i32_1 = arith.constant 0 : i32
    %c0_i32_2 = arith.constant 0 : i32
    return %c0_i32, %c0_i32_0, %c0_i32_1 : i32, i32, i32
  }
  func.func @transform_5(%arg0: i32) -> (i32, i32, i32) {
    %c0_i32 = arith.constant 0 : i32
    %c0_i32_0 = arith.constant 0 : i32
    %c0_i32_1 = arith.constant 0 : i32
    %c0_i32_2 = arith.constant 0 : i32
    return %c0_i32, %c0_i32_0, %c0_i32_1 : i32, i32, i32
  }
  func.func @transform_6(%arg0: i32) -> (i32, i32, i32) {
    %c0_i32 = arith.constant 0 : i32
    %c0_i32_0 = arith.constant 0 : i32
    %c0_i32_1 = arith.constant 0 : i32
    %c0_i32_2 = arith.constant 0 : i32
    return %c0_i32, %c0_i32_0, %c0_i32_1 : i32, i32, i32
  }
  func.func @transform_7(%arg0: i32) -> (i32, i32, i32) {
    %c0_i32 = arith.constant 0 : i32
    %c0_i32_0 = arith.constant 0 : i32
    %c0_i32_1 = arith.constant 0 : i32
    %c0_i32_2 = arith.constant 0 : i32
    return %c0_i32, %c0_i32_0, %c0_i32_1 : i32, i32, i32
  }
  func.func @transform_8(%arg0: i32) -> (i32, i32, i32) {
    %c0_i32 = arith.constant 0 : i32
    %c0_i32_0 = arith.constant 0 : i32
    %c0_i32_1 = arith.constant 0 : i32
    %c0_i32_2 = arith.constant 0 : i32
    return %c0_i32, %c0_i32_0, %c0_i32_1 : i32, i32, i32
  }
  func.func @transform_9(%arg0: i32) -> (i32, i32, i32) {
    %c0_i32 = arith.constant 0 : i32
    %c0_i32_0 = arith.constant 0 : i32
    %c0_i32_1 = arith.constant 0 : i32
    %c0_i32_2 = arith.constant 0 : i32
    return %c0_i32, %c0_i32_0, %c0_i32_1 : i32, i32, i32
  }
  func.func @transform_10(%arg0: i32) -> (i32, i32, i32) {
    %c0_i32 = arith.constant 0 : i32
    %c0_i32_0 = arith.constant 0 : i32
    %c0_i32_1 = arith.constant 0 : i32
    %c0_i32_2 = arith.constant 0 : i32
    return %c0_i32, %c0_i32_0, %c0_i32_1 : i32, i32, i32
  }
  func.func @transform_11(%arg0: i32) -> (i32, i32, i32) {
    %c0_i32 = arith.constant 0 : i32
    %c0_i32_0 = arith.constant 0 : i32
    %c0_i32_1 = arith.constant 0 : i32
    %c0_i32_2 = arith.constant 0 : i32
    return %c0_i32, %c0_i32_0, %c0_i32_1 : i32, i32, i32
  }
  func.func @transform_12(%arg0: i32) -> (i32, i32) {
    %c0_i32 = arith.constant 0 : i32
    %c0_i32_0 = arith.constant 0 : i32
    %c0_i32_1 = arith.constant 0 : i32
    return %c0_i32, %c0_i32_0 : i32, i32
  }
  func.func @transform_13(%arg0: i32) -> (i32, i32) {
    %c0_i32 = arith.constant 0 : i32
    %c0_i32_0 = arith.constant 0 : i32
    return %arg0, %c0_i32 : i32, i32
  }
}

</mosaic_0001>

<bundles_post_ra>
// kernel: moderntcn_forward.1
= control target key start
LH: loop header
LB: loop body
LE: loop exit
PB: predicated region body
PF: predicated region fallthrough
CT: control target
= control target key end

     0   :  { %18 = vsyncpa [#allocation3], 0  ;;  %s2751_s0 = inlined_call_operand.vmem [shape: f32[16,32], index: 0, kind: input, shape index: {}]   ;;  %s2752_s1 = inlined_call_operand.hbm [shape: bf16[32,128], index: 1, kind: input, shape index: {}]   ;;  %s2753_s2 = inlined_call_operand.vmem [shape: f32[1,128], index: 2, kind: input, shape index: {}]   ;;  %s2754_s3 = inlined_call_operand.vmem [shape: f32[2,13,128], index: 3, kind: input, shape index: {}]   ;;  %s2755_s4 = inlined_call_operand.vmem [shape: f32[2,1,128], index: 4, kind: input, shape index: {}]   ;;  %s2756_s5 = inlined_call_operand.vmem [shape: bf16[2,128,128], index: 5, kind: input, shape index: {}]   ;;  %s2757_s6 = inlined_call_operand.vmem [shape: f32[2,1,128], index: 6, kind: input, shape index: {}]   ;;  %s2758_s7 = inlined_call_operand.vmem [shape: bf16[2,128,128], index: 7, kind: input, shape index: {}]   ;;  %s2759_s8 = inlined_call_operand.vmem [shape: f32[2,1,128], index: 8, kind: input, shape index: {}]   ;;  %s2760_s9 = inlined_call_operand.vmem [shape: bf16[2,128,128], index: 9, kind: input, shape index: {}]   ;;  %s2761_s10 = inlined_call_operand.vmem [shape: f32[2,1,128], index: 10, kind: input, shape index: {}]   ;;  %s2762_s11 = inlined_call_operand.hbm [shape: f32[3,8,128], index: 11, kind: input, shape index: {}]   ;;  %s2763_s12 = inlined_call_operand.vmem [shape: f32[1,3], index: 12, kind: input, shape index: {}]   ;;  %s2764_s13 = inlined_call_operand.hbm [shape: f32[2,3], index: 13, kind: output, shape index: {}]  }
   0x1   :  { %19 = vsyncpa [#allocation6], 0 }
   0x2   :  { %20 = vsyncpa [#allocation4], 0  ;;  %s2056_s25 = smov [#allocation2]  }
   0x3   :  { %s28_s26 = sshll.u32 %s2056_s25, 4  ;;  %s29_s26 = int_to_ptr.vmem [resolvable:$true] %s28_s26 }
   0x4   :  { %s1998_s27 = scalar_lea.vmem %s29_s26, 256  ;;  %p2003_p1 = scmp.lt.s32.totalorder %s29_s26, %s29_s26 }
   0x5   :  { %p1999_p0 = scmp.ne.s32.totalorder %s29_s26, %s1998_s27  ;;  %p2004_p2 = scmp.lt.s32.totalorder %s1998_s27, %s1998_s27 }
   0x7   :  { %p2005_p3 = por %p2004_p2, %p2003_p1 }
   0x9   :  { %p2006_p4 = pnand %p2005_p3, %p1999_p0 }
   0xb   :  { %2009 = shalt.err (!%p2006_p4)
}
   0xc   :  { %s2057_s28 = smov 64   ;;  %s2058_s29 = smov 4  }
   0xd   :  { %34 = dma.hbm_to_vmem [thread:$0]  %s2752_s1, 256, %s29_s26, [#allocation3], %s2057_s28, %s2057_s28, %s2058_s29  }
   0xe   :  { %s2059_s15 = smov [#allocation5]  }
   0xf   :  { %s58_s16 = sshll.u32 %s2059_s15, 4  ;;  %s59_s16 = int_to_ptr.vmem [resolvable:$true] %s58_s16 }
  0x10   :  { %s2018_s17 = scalar_lea.vmem %s59_s16, 384  ;;  %p2023_p6 = scmp.lt.s32.totalorder %s59_s16, %s59_s16 }
  0x11   :  { %p2019_p5 = scmp.ne.s32.totalorder %s59_s16, %s2018_s17  ;;  %p2024_p7 = scmp.lt.s32.totalorder %s2018_s17, %s2018_s17 }
  0x13   :  { %p2025_p8 = por %p2024_p7, %p2023_p6 }
  0x15   :  { %p2026_p9 = pnand %p2025_p8, %p2019_p5 }
  0x17   :  { %2029 = shalt.err (!%p2026_p9)
}
  0x18   :  { %s2060_s18 = smov 128   ;;  %s2061_s19 = smov 8  }
  0x19   :  { %64 = dma.hbm_to_vmem [thread:$0]  %s2762_s11, 384, %s59_s16, [#allocation6], %s2060_s18, %s2060_s18, %s2061_s19  }
  0x1a   :  { %2050 = dma.done.wait [#allocation3], 256  }
  0x1b   :  { %2051 = vsyncadd [#allocation3], 4294967040 }
  0x1c   :  { %2052 = dma.done.wait [#allocation6], 384  }
  0x1d   :  { %2053 = vsyncadd [#allocation6], 4294966912  ;;  %v1920_v0 = vld [vmem:[#allocation2 + $0x8] sm:$0xff]   ;;  %vm99_vm0 = vcmask 261120   ;;  %v1921_v1 = vld [vmem:[#allocation2] sm:$0xff]   ;;  %v2765_v12 = vlaneseq  ;;  %vm174_vm1 = vcmask 1046528  }
  0x1e   :  { %1792 = vmatprep.subr.bf16.mxu0 %v1920_v0  ;;  %v74_v2 = vld [vmem:[%s2751_s0] sm:$0xff]  ;;  %v75_v3 = vld [vmem:[%s2751_s0 + $0x8] sm:$0xff]  ;;  %v1922_v4 = vld [vmem:[%s2756_s5 + $0x38] sm:$0xff]   ;;  %vm190_vm2 = vcmask 1045504   ;;  %vm206_vm3 = vcmask 1044480   ;;  %vm222_vm4 = vcmask 1043456  }
  0x1f   :  { %1793 = vmatpush3.bf16.msra.mxu0 %v1920_v0  ;;  %1796 = vmatprep.mubr.msk.f32.mxu0 %vm99_vm0, %v74_v2  ;;  %v1923_v5 = vld [vmem:[%s2756_s5 + $0x30] sm:$0xff]   ;;  %v1924_v6 = vld [vmem:[%s2756_s5 + $0x28] sm:$0xff]   ;;  %v1925_v7 = vld [vmem:[%s2756_s5 + $0x20] sm:$0xff]   ;;  %v2170_v13 = vshrl.u32 %v2765_v12, 7  ;;  %vm238_vm5 = vcmask 1042432   ;;  %vm264_vm6 = vcmask 1040384  }
  0x20   :  { %1794 = vmatprep.subr.bf16.mxu0 %v1921_v1  ;;  %1799 = vmatprep.subr.bf16.mxu1 %v1922_v4  ;;  %v1926_v8 = vld [vmem:[%s2756_s5 + $0x18] sm:$0xff]   ;;  %v1927_v9 = vld [vmem:[%s2756_s5 + $0x10] sm:$0xff]   ;;  %v1928_v10 = vld [vmem:[%s2756_s5 + $0x8] sm:$0xff]   ;;  %s2062_s16 = smov [#allocation7]   ;;  %vm1557_vm10 = vcmask 16384  }
  0x21   :  { %1800 = vmatpush3.bf16.msra.mxu1 %v1922_v4  ;;  %v1929_v11 = vld [vmem:[%s2756_s5] sm:$0xff]   ;;  %v2173_v14 = vsub.s32 0, %v2170_v13  ;;  %v2176_v15 = vsub.s32 1, %v2170_v13  ;;  %v2179_v16 = vsub.s32 2, %v2170_v13  ;;  %v2185_v18 = vsub.s32 3, %v2170_v13  ;;  %s1603_s17 = sshll.u32 %s2062_s16, 4  ;;  %s1604_s17 = int_to_ptr.vmem [resolvable:$true] %s1603_s17 }
  0x22   :  { %1801 = vmatprep.subr.bf16.mxu1 %v1923_v5  ;;  %v149_v17 = vld [vmem:[%s2754_s3] sm:$0xff]  ;;  %v2188_v19 = vsub.s32 4, %v2170_v13  ;;  %v232_v20 = vsub.s32 5, %v2170_v13  ;;  %v258_v21 = vsub.s32 7, %v2170_v13  ;;  %v150_v22 = vld [vmem:[%s2754_s3 + $0x8] sm:$0x1f]  ;;  %p2035_p11 = scmp.lt.s32.totalorder %s1604_s17, %s1604_s17 }
  0x23   :  { %1795 = vmatpush3.bf16.msra.mxu0 %v1921_v1  ;;  %v155_v23 = vrot.slane %v149_v17, %v2173_v14  ;;  %v169_v24 = vrot.slane %v149_v17, %v2176_v15  ;;  %v2198_v25 = vrot.slane %v149_v17, %v2179_v16  ;;  %v2201_v26 = vrot.slane %v149_v17, %v2185_v18  ;;  %v2232_v37 = vld [vmem:[%s2755_s4] ss:$0 sm:$0xff] }
  0x24   :  { %v2204_v27 = vrot.slane %v149_v17, %v2188_v19  ;;  %v2208_v28 = vrot.slane %v149_v17, %v232_v20  ;;  %v2212_v29 = vrot.slane %v149_v17, %v258_v21  ;;  %v2215_v30 = vrot.slane %v150_v22, %v2176_v15  ;;  %v1613_v48 = vld [vmem:[%s2753_s2] ss:$0 sm:$0xff] }
  0x25   :  { %1802 = vmatpush3.bf16.msra.mxu1 %v1923_v5  ;;  %v2218_v31 = vrot.slane %v150_v22, %v2179_v16  ;;  %v2221_v32 = vrot.slane %v150_v22, %v2185_v18  ;;  %v156_v33 = vmul.f32 0.0, %v155_v23  ;;  %v2223_v34 = vmul.f32 0.0, %v169_v24 }
  0x26   :  { %1797 = vmatmul.mubr.msk.f32.vlgmr.msra.gmra.mxu0 %vm99_vm0, %v75_v3  ;;  %1803 = vmatprep.subr.bf16.mxu1 %v1924_v6  ;;  %v2226_v35 = vmul.f32 0.0, %v2198_v25  ;;  %v248_v36 = vsub.s32 6, %v2170_v13  ;;  %v2235_v38 = vmul.f32 0.0, %v2201_v26  ;;  %v2238_v39 = vrot.slane %v150_v22, %v2188_v19 }
  0x27   :  { %v2241_v40 = vmul.f32 0.0, %v2204_v27  ;;  %v2244_v41 = vmul.f32 0.0, %v2208_v28  ;;  %v2247_v42 = vmul.f32 0.0, %v2212_v29  ;;  %v2250_v44 = vrot.slane %v150_v22, %v2173_v14 }
  0x28   :  { %v285_v45 = vmul.f32 0.0, %v2215_v30  ;;  %v300_v46 = vmul.f32 0.0, %v2218_v31  ;;  %v315_v47 = vmul.f32 0.0, %v2221_v32  ;;  %v2259_v49 = vadd.f32 %v2232_v37, %v156_v33 }
  0x29   :  { %1804 = vmatpush3.bf16.msra.mxu1 %v1924_v6  ;;  %v175_v50 = vrot.slane %v2223_v34, 1  ;;  %v191_v51 = vrot.slane %v2226_v35, 2  ;;  %v249_v52 = vrot.slane %v149_v17, %v248_v36  ;;  %v207_v54 = vrot.slane %v2235_v38, 3 }
  0x2a   :  { %1805 = vmatprep.subr.bf16.mxu1 %v1925_v7  ;;  %v330_v55 = vmul.f32 0.0, %v2238_v39  ;;  %v223_v57 = vrot.slane %v2241_v40, 4  ;;  %v239_v58 = vrot.slane %v2244_v41, 5  ;;  %v266_v59 = vrot.slane %v2247_v42, 7 }
  0x2b   :  { %v2274_v61 = vrot.slane %v285_v45, 1  ;;  %v2276_v62 = vrot.slane %v300_v46, 2  ;;  %v2278_v63 = vrot.slane %v315_v47, 3 }
  0x2d   :  { %1806 = vmatpush3.bf16.msra.mxu1 %v1925_v7  ;;  %v2294_v7 = vrot.slane %v330_v55, 4 }
  0x2e   :  { %1807 = vmatprep.subr.bf16.mxu1 %v1926_v8 }
  0x31   :  { %1808 = vmatpush3.bf16.msra.mxu1 %v1926_v8 }
  0x32   :  { %1809 = vmatprep.subr.bf16.mxu1 %v1927_v9 }
  0x35   :  { %1810 = vmatpush3.bf16.msra.mxu1 %v1927_v9 }
  0x36   :  { %1811 = vmatprep.subr.bf16.mxu1 %v1928_v10 }
  0x39   :  { %1812 = vmatpush3.bf16.msra.mxu1 %v1928_v10 }
  0x3a   :  { %1813 = vmatprep.subr.bf16.mxu1 %v1929_v11 }
  0x3d   :  { %1814 = vmatpush3.bf16.msra.mxu1 %v1929_v11  ;;  %v2298_v11 = vmul.f32 0.0, %v2250_v44 }
  0xe6   :  { %v1798_v43 = vpop.f32.mrf.mxu0 }
  0xe7   :  { %v2272_v60 = vadd.f32 %v1798_v43, %v1613_v48 }
  0xe8   :  { %v140_v53 = vpop.f32.mrf.mxu0 }
  0xe9   :  { %v2267_v56 = vadd.f32 %v1613_v48, %v140_v53  ;;  %v340_v33 = vmul.f32 %v155_v23, %v2272_v60  ;;  %v342_v43 = vmul.f32 %v169_v24, %v2272_v60  ;;  %v350_v48 = vmul.f32 %v2198_v25, %v2272_v60 }
  0xeb   :  { %v157_v0 = vmul.f32 %v155_v23, %v2267_v56  ;;  %v171_v1 = vmul.f32 %v169_v24, %v2267_v56  ;;  %v187_v2 = vmul.f32 %v2198_v25, %v2267_v56  ;;  %v203_v3 = vmul.f32 %v2201_v26, %v2267_v56 }
  0xec   :  { %v219_v4 = vmul.f32 %v2204_v27, %v2267_v56  ;;  %v235_v5 = vmul.f32 %v2208_v28, %v2267_v56  ;;  %v2292_v6 = vmul.f32 %v2212_v29, %v2267_v56  ;;  %v250_v22 = vmul.f32 %v249_v52, %v2267_v56 }
  0xed   :  { %v165_v8 = vadd.f32 %v2232_v37, %v157_v0  ;;  %v176_v9 = vrot.slane %v171_v1, 1  ;;  %v192_v10 = vrot.slane %v187_v2, 2  ;;  %v208_v17 = vrot.slane %v203_v3, 3 }
  0xee   :  { %v224_v47 = vrot.slane %v219_v4, 4  ;;  %v240_v55 = vrot.slane %v235_v5, 5  ;;  %v265_v0 = vrot.slane %v2292_v6, 7  ;;  %v358_v1 = vmul.f32 %v2201_v26, %v2272_v60 }
  0xef   :  { %v177_v45 = vsel %vm174_vm1, %v175_v50, %v176_v9  ;;  %v181_v46 = vadd.f32 %v176_v9, %v165_v8  ;;  %v193_v23 = vsel %vm190_vm2, %v191_v51, %v192_v10  ;;  %v366_v2 = vmul.f32 %v2204_v27, %v2272_v60 }
  0xf0   :  { %v180_v53 = vadd.f32 %v177_v45, %v2259_v49  ;;  %v374_v3 = vmul.f32 %v2208_v28, %v2272_v60  ;;  %v209_v4 = vsel %vm206_vm3, %v207_v54, %v208_v17  ;;  %v252_v5 = vrot.slane %v250_v22, 6 }
  0xf1   :  { %v197_v24 = vadd.f32 %v192_v10, %v181_v46  ;;  %v382_v6 = vmul.f32 %v249_v52, %v2272_v60  ;;  %v225_v8 = vsel %vm222_vm4, %v223_v57, %v224_v47  ;;  %v341_v9 = vadd.f32 %v2232_v37, %v340_v33 }
  0xf2   :  { %v196_v25 = vadd.f32 %v193_v23, %v180_v53  ;;  %v344_v10 = vrot.slane %v342_v43, 1  ;;  %v241_v28 = vsel %vm238_vm5, %v239_v58, %v240_v55  ;;  %v267_v45 = vsel %vm264_vm6, %v265_v0, %v266_v59 }
  0xf3   :  { %v213_v26 = vadd.f32 %v208_v17, %v197_v24  ;;  %v352_v22 = vrot.slane %v350_v48, 2  ;;  %v276_v52 = vmul.f32 %v2250_v44, %v2267_v56  ;;  %v284_v17 = vmul.f32 %v2215_v30, %v2267_v56 }
  0xf4   :  { %v212_v27 = vadd.f32 %v209_v4, %v196_v25  ;;  %v345_v37 = vsel %vm174_vm1, %v175_v50, %v344_v10  ;;  %v299_v43 = vmul.f32 %v2218_v31, %v2267_v56  ;;  %v314_v53 = vmul.f32 %v2221_v32, %v2267_v56 }
  0xf5   :  { %v229_v46 = vadd.f32 %v224_v47, %v213_v26  ;;  %v348_v48 = vadd.f32 %v345_v37, %v2259_v49  ;;  %v349_v23 = vadd.f32 %v344_v10, %v341_v9  ;;  %v353_v24 = vsel %vm190_vm2, %v191_v51, %v352_v22 }
  0xf6   :  { %v228_v33 = vadd.f32 %v225_v8, %v212_v27  ;;  %v360_v25 = vrot.slane %v358_v1, 3  ;;  %v329_v34 = vmul.f32 %v2238_v39, %v2267_v56  ;;  %v368_v26 = vrot.slane %v366_v2, 4 }
  0xf7   :  { %v245_v47 = vadd.f32 %v240_v55, %v229_v46  ;;  %v356_v50 = vadd.f32 %v353_v24, %v348_v48  ;;  %v357_v27 = vadd.f32 %v352_v22, %v349_v23  ;;  %v376_v49 = vrot.slane %v374_v3, 5 }
  0xf8   :  { %v244_v4 = vadd.f32 %v241_v28, %v228_v33  ;;  %v361_v12 = vsel %vm206_vm3, %v207_v54, %v360_v25  ;;  %v288_v9 = vrot.slane %v284_v17, 1  ;;  %v303_v10 = vrot.slane %v299_v43, 2 }
  0xf9   :  { %v255_v8 = vadd.f32 %v252_v5, %v245_v47  ;;  %v364_v35 = vadd.f32 %v361_v12, %v356_v50  ;;  %v365_v51 = vadd.f32 %v360_v25, %v357_v27  ;;  %v369_v1 = vsel %vm222_vm4, %v223_v57, %v368_v26 }
  0xfa   :  { %v254_v55 = vadd.f32 %v252_v5, %v244_v4  ;;  %v388_v2 = vmul.f32 %v2212_v29, %v2272_v60  ;;  %v318_v22 = vrot.slane %v314_v53, 3  ;;  %v333_v37 = vrot.slane %v329_v34, 4 }
  0xfb   :  { %v271_v46 = vadd.f32 %v267_v45, %v255_v8  ;;  %v372_v38 = vadd.f32 %v369_v1, %v364_v35  ;;  %v373_v3 = vadd.f32 %v368_v26, %v365_v51  ;;  %v377_v12 = vsel %vm238_vm5, %v239_v58, %v376_v49 }
  0xfc   :  { %v270_v28 = vadd.f32 %v265_v0, %v254_v55  ;;  %v399_v5 = vmul.f32 %v2215_v30, %v2272_v60  ;;  %v384_v57 = vrot.slane %v382_v6, 6  ;;  %v390_v17 = vrot.slane %v388_v2, 7 }
  0xfd   :  { %v279_v54 = vadd.f32 %v2298_v11, %v271_v46  ;;  %v380_v45 = vadd.f32 %v377_v12, %v372_v38  ;;  %v290_v29 = vsel %vm174_vm1, %v288_v9, %v2274_v61  ;;  %v381_v33 = vadd.f32 %v376_v49, %v373_v3 }
  0xfe   :  { %v278_v40 = vadd.f32 %v276_v52, %v270_v28  ;;  %v406_v43 = vmul.f32 %v2218_v31, %v2272_v60  ;;  %v305_v41 = vsel %vm190_vm2, %v303_v10, %v2276_v62  ;;  %v320_v30 = vsel %vm206_vm3, %v318_v22, %v2278_v63 }
  0xff   :  { %v294_v0 = vadd.f32 %v2274_v61, %v279_v54  ;;  %v386_v58 = vadd.f32 %v384_v57, %v380_v45  ;;  %v387_v52 = vadd.f32 %v384_v57, %v381_v33  ;;  %v401_v48 = vrot.slane %v399_v5, 1  ;;  %v1934_v45 = vld [vmem:[%s2758_s7 + $0x18] sm:$0xff]   ;;  %v1935_v57 = vld [vmem:[%s2758_s7 + $0x10] sm:$0xff]  }
 0x100   :  { %v293_v53 = vadd.f32 %v290_v29, %v278_v40  ;;  %v413_v47 = vmul.f32 %v2221_v32, %v2272_v60  ;;  %v391_v31 = vsel %vm264_vm6, %v390_v17, %v266_v59  ;;  %v396_v25 = vmul.f32 %v2250_v44, %v2272_v60  ;;  %v1931_v40 = vld [vmem:[%s2758_s7 + $0x30] sm:$0xff]   ;;  %v1937_v29 = vld [vmem:[%s2758_s7] sm:$0xff]  }
 0x101   :  { %v309_v6 = vadd.f32 %v2276_v62, %v294_v0  ;;  %v394_v24 = vadd.f32 %v390_v17, %v386_v58  ;;  %v395_v34 = vadd.f32 %v391_v31, %v387_v52  ;;  %v408_v50 = vrot.slane %v406_v43, 2  ;;  %v1936_v17 = vld [vmem:[%s2758_s7 + $0x8] sm:$0xff]   ;;  %v1619_v0 = vld [vmem:[%s2757_s6] ss:$0 sm:$0xff] }
 0x102   :  { %v308_v23 = vadd.f32 %v305_v41, %v293_v53  ;;  %v420_v26 = vmul.f32 %v2238_v39, %v2272_v60  ;;  %v335_v32 = vsel %vm222_vm4, %v333_v37, %v2294_v7  ;;  %v402_v49 = vsel %vm174_vm1, %v401_v48, %v2274_v61 }
 0x103   :  { %v324_v4 = vadd.f32 %v2278_v63, %v309_v6  ;;  %v397_v27 = vadd.f32 %v396_v25, %v394_v24  ;;  %v398_v59 = vadd.f32 %v395_v34, %v2298_v11  ;;  %v415_v44 = vrot.slane %v413_v47, 3 }
 0x104   :  { %v323_v8 = vadd.f32 %v320_v30, %v308_v23  ;;  %v409_v39 = vsel %vm190_vm2, %v408_v50, %v2276_v62  ;;  %v422_v46 = vrot.slane %v420_v26, 4 }
 0x105   :  { %v339_v42 = vadd.f32 %v2294_v7, %v324_v4  ;;  %v404_v9 = vadd.f32 %v402_v49, %v397_v27  ;;  %v405_v35 = vadd.f32 %v398_v59, %v2274_v61  ;;  %v416_v11 = vsel %vm206_vm3, %v415_v44, %v2278_v63  ;;  %v1938_v59 = vld [vmem:[%s2760_s9 + $0x38] sm:$0xff]   ;;  %v1939_v49 = vld [vmem:[%s2760_s9 + $0x30] sm:$0xff]   ;;  %v1940_v44 = vld [vmem:[%s2760_s9 + $0x28] sm:$0xff]  }
 0x106   :  { %v338_v55 = vadd.f32 %v335_v32, %v323_v8  ;;  %v423_v61 = vsel %vm222_vm4, %v422_v46, %v2294_v7  ;;  %1837 = vmatprep.subr.bf16.mxu1 %v1938_v59  ;;  %v1628_v46 = vld [vmem:[%s2759_s8] ss:$0 sm:$0xff] }
 0x107   :  { %v430_v10 = vrot.slane %v339_v42, 2  ;;  %v411_v1 = vadd.f32 %v409_v39, %v404_v9  ;;  %v412_v2 = vadd.f32 %v405_v35, %v2276_v62  ;;  %v1930_v62 = vld [vmem:[%s2758_s7 + $0x38] sm:$0xff]   ;;  %v1944_v35 = vld [vmem:[%s2760_s9 + $0x8] sm:$0xff]   ;;  %v1945_v39 = vld [vmem:[%s2760_s9] sm:$0xff]  }
 0x108   :  { %v429_v51 = vrot.slane %v338_v55, 2  ;;  %1818 = vmatprep.subr.bf16.mxu0 %v1930_v62  ;;  %v1941_v55 = vld [vmem:[%s2760_s9 + $0x20] sm:$0xff]   ;;  %v1942_v9 = vld [vmem:[%s2760_s9 + $0x18] sm:$0xff]  }
 0x109   :  { %v418_v22 = vadd.f32 %v416_v11, %v411_v1  ;;  %v419_v37 = vadd.f32 %v412_v2, %v2278_v63  ;;  %1819 = vmatpush3.bf16.msra.mxu0 %v1930_v62  ;;  %v1932_v63 = vld [vmem:[%s2758_s7 + $0x28] sm:$0xff]  }
 0x10a   :  { %v431_v28 = vsel %vm190_vm2, %v429_v51, %v430_v10  ;;  %1820 = vmatprep.subr.bf16.mxu0 %v1931_v40  ;;  %v1943_v10 = vld [vmem:[%s2760_s9 + $0x10] sm:$0xff]  }
 0x10b   :  { %1815 = vmatprep.mubr.f32.mxu1 %v431_v28  ;;  %v425_v38 = vadd.f32 %v423_v61, %v418_v22  ;;  %v426_v54 = vadd.f32 %v419_v37, %v2294_v7  ;;  %v1933_v7 = vld [vmem:[%s2758_s7 + $0x20] sm:$0xff]  }
 0x10d   :  { %v435_v3 = vrot.slane %v425_v38, 2  ;;  %v436_v12 = vrot.slane %v426_v54, 2  ;;  %1821 = vmatpush3.bf16.msra.mxu0 %v1931_v40 }
 0x10e   :  { %1822 = vmatprep.subr.bf16.mxu0 %v1932_v63 }
 0x10f   :  { %v437_v5 = vsel %vm190_vm2, %v435_v3, %v436_v12 }
 0x110   :  { %1816 = vmatmul.mubr.f32.vlgmr.msra.gmra.mxu1 %v437_v5 }
 0x111   :  { %1823 = vmatpush3.bf16.msra.mxu0 %v1932_v63  ;;  %1838 = vmatpush3.bf16.msra.mxu1 %v1938_v59 }
 0x112   :  { %1824 = vmatprep.subr.bf16.mxu0 %v1933_v7  ;;  %1839 = vmatprep.subr.bf16.mxu1 %v1939_v49 }
 0x115   :  { %1825 = vmatpush3.bf16.msra.mxu0 %v1933_v7  ;;  %1840 = vmatpush3.bf16.msra.mxu1 %v1939_v49 }
 0x116   :  { %1826 = vmatprep.subr.bf16.mxu0 %v1934_v45  ;;  %1841 = vmatprep.subr.bf16.mxu1 %v1940_v44 }
 0x119   :  { %1827 = vmatpush3.bf16.msra.mxu0 %v1934_v45  ;;  %1842 = vmatpush3.bf16.msra.mxu1 %v1940_v44 }
 0x11a   :  { %1828 = vmatprep.subr.bf16.mxu0 %v1935_v57  ;;  %1843 = vmatprep.subr.bf16.mxu1 %v1941_v55 }
 0x11d   :  { %1829 = vmatpush3.bf16.msra.mxu0 %v1935_v57  ;;  %1844 = vmatpush3.bf16.msra.mxu1 %v1941_v55 }
 0x11e   :  { %1830 = vmatprep.subr.bf16.mxu0 %v1936_v17  ;;  %1845 = vmatprep.subr.bf16.mxu1 %v1942_v9 }
 0x121   :  { %1831 = vmatpush3.bf16.msra.mxu0 %v1936_v17  ;;  %1846 = vmatpush3.bf16.msra.mxu1 %v1942_v9 }
 0x122   :  { %1832 = vmatprep.subr.bf16.mxu0 %v1937_v29  ;;  %1847 = vmatprep.subr.bf16.mxu1 %v1943_v10 }
 0x125   :  { %1833 = vmatpush3.bf16.msra.mxu0 %v1937_v29  ;;  %1848 = vmatpush3.bf16.msra.mxu1 %v1943_v10 }
 0x126   :  { %1849 = vmatprep.subr.bf16.mxu1 %v1944_v35 }
 0x129   :  { %1850 = vmatpush3.bf16.msra.mxu1 %v1944_v35 }
 0x12a   :  { %1851 = vmatprep.subr.bf16.mxu1 %v1945_v39 }
 0x12d   :  { %1852 = vmatpush3.bf16.msra.mxu1 %v1945_v39 }
 0x1d0   :  { %v1817_v33 = vpop.f32.mrf.mxu1 }
 0x1d1   :  { %v550_v43 = vadd.f32 %v1817_v33, %v1619_v0  ;;  %v1946_v33 = vld [vmem:[%s2756_s5 + $0x78] sm:$0xff]  }
 0x1d2   :  { %v544_v53 = vpop.f32.mrf.mxu1  ;;  %1856 = vmatprep.subr.bf16.mxu0 %v1946_v33 }
 0x1d3   :  { %v554_v41 = vmul.f32 %v550_v43, %v550_v43  ;;  %v545_v30 = vadd.f32 %v1619_v0, %v544_v53  ;;  %v1948_v53 = vld [vmem:[%s2756_s5 + $0x68] sm:$0xff]  }
 0x1d5   :  { %v556_v58 = vmul.f32 %v554_v41, %v550_v43  ;;  %v553_v6 = vmul.f32 %v545_v30, %v545_v30  ;;  %v1949_v41 = vld [vmem:[%s2756_s5 + $0x60] sm:$0xff]  }
 0x1d7   :  { %v558_v52 = vmul.f32 0.044715, %v556_v58  ;;  %v555_v48 = vmul.f32 %v553_v6, %v545_v30  ;;  %v1951_v58 = vld [vmem:[%s2756_s5 + $0x50] sm:$0xff]   ;;  %v1952_v6 = vld [vmem:[%s2756_s5 + $0x48] sm:$0xff]  }
 0x1d9   :  { %v560_v47 = vadd.f32 %v558_v52, %v550_v43  ;;  %v557_v23 = vmul.f32 0.044715, %v555_v48  ;;  %v1953_v52 = vld [vmem:[%s2756_s5 + $0x40] sm:$0xff]   ;;  %v1646_v48 = vld [vmem:[%s2754_s3 + $0x10] sm:$0xff] }
 0x1db   :  { %v562_v31 = vmul.f32 0.7978846, %v560_v47  ;;  %v559_v24 = vadd.f32 %v557_v23, %v545_v30  ;;  %v829_v47 = vrot.slane %v1646_v48, %v2173_v14  ;;  %v1647_v23 = vld [vmem:[%s2754_s3 + $0x18] sm:$0x1f] }
 0x1dc   :  { %v2522_v55 = vrot.slane %v1647_v23, %v2185_v18 }
 0x1dd   :  { %1970 = vtanh.f32 %v562_v31  ;;  %v561_v25 = vmul.f32 0.7978846, %v559_v24  ;;  %v843_v31 = vrot.slane %v1646_v48, %v2176_v15  ;;  %v858_v24 = vrot.slane %v1646_v48, %v2179_v16 }
 0x1df   :  { %1972 = vtanh.f32 %v561_v25  ;;  %v873_v25 = vrot.slane %v1646_v48, %v2185_v18  ;;  %v2514_v59 = vmul.f32 0.0, %v858_v24 }
 0x1e1   :  { %v2516_v49 = vmul.f32 0.0, %v873_v25 }
 0x1ea   :  { %v1971_v4 = vpop.eup %1970 }
 0x1eb   :  { %v566_v34 = vadd.f32 1.0, %v1971_v4  ;;  %v2491_v4 = vrot.slane %v1646_v48, %v2188_v19 }
 0x1ec   :  { %v1973_v50 = vpop.eup %1972 }
 0x1ed   :  { %v565_v26 = vadd.f32 1.0, %v1973_v50  ;;  %v568_v8 = vmul.f32 0.5, %v566_v34  ;;  %v830_v34 = vmul.f32 0.0, %v829_v47  ;;  %v2495_v50 = vrot.slane %v1646_v48, %v232_v20 }
 0x1ee   :  { %v2519_v44 = vmul.f32 0.0, %v2491_v4 }
 0x1ef   :  { %v567_v32 = vmul.f32 0.5, %v565_v26  ;;  %v570_v42 = vmul.f32 %v568_v8, %v550_v43  ;;  %v1947_v43 = vld [vmem:[%s2756_s5 + $0x70] sm:$0xff]   ;;  %v2500_v26 = vld [vmem:[%s2755_s4 + $0x1] ss:$0 sm:$0xff]  ;;  %v2504_v8 = vrot.slane %v1646_v48, %v258_v21 }
 0x1f0   :  { %v2525_v21 = vadd.f32 %v2500_v26, %v830_v34 }
 0x1f1   :  { %v569_v27 = vmul.f32 %v567_v32, %v545_v30  ;;  %v1950_v30 = vld [vmem:[%s2756_s5 + $0x58] sm:$0xff]   ;;  %v2507_v32 = vrot.slane %v1647_v23, %v2176_v15  ;;  %v2528_v15 = vmul.f32 0.0, %v2495_v50  ;;  %v2535_v35 = vmul.f32 0.0, %v2504_v8 }
 0x1f3   :  { %1834 = vmatprep.mubr.f32.mxu0 %v569_v27  ;;  %v2510_v27 = vrot.slane %v1647_v23, %v2179_v16  ;;  %v2531_v16 = vrot.slane %v1647_v23, %v2188_v19  ;;  %v953_v39 = vmul.f32 0.0, %v2507_v32  ;;  %v863_v19 = vrot.slane %v2514_v59, 2 }
 0x1f4   :  { %1835 = vmatmul.mubr.f32.vlgmr.msra.gmra.mxu0 %v570_v42  ;;  %v2512_v42 = vmul.f32 0.0, %v843_v31 }
 0x1f5   :  { %1857 = vmatpush3.bf16.msra.mxu0 %v1946_v33  ;;  %v968_v18 = vmul.f32 0.0, %v2510_v27 }
 0x1f6   :  { %1858 = vmatprep.subr.bf16.mxu0 %v1947_v43 }
 0x1f9   :  { %1859 = vmatpush3.bf16.msra.mxu0 %v1947_v43 }
 0x1fa   :  { %1860 = vmatprep.subr.bf16.mxu0 %v1948_v53 }
 0x1fd   :  { %1861 = vmatpush3.bf16.msra.mxu0 %v1948_v53 }
 0x1fe   :  { %1862 = vmatprep.subr.bf16.mxu0 %v1949_v41 }
 0x201   :  { %1863 = vmatpush3.bf16.msra.mxu0 %v1949_v41 }
 0x202   :  { %1864 = vmatprep.subr.bf16.mxu0 %v1950_v30 }
 0x205   :  { %1865 = vmatpush3.bf16.msra.mxu0 %v1950_v30 }
 0x206   :  { %1866 = vmatprep.subr.bf16.mxu0 %v1951_v58 }
 0x209   :  { %1867 = vmatpush3.bf16.msra.mxu0 %v1951_v58 }
 0x20a   :  { %1868 = vmatprep.subr.bf16.mxu0 %v1952_v6 }
 0x20d   :  { %1869 = vmatpush3.bf16.msra.mxu0 %v1952_v6 }
 0x20e   :  { %1870 = vmatprep.subr.bf16.mxu0 %v1953_v52 }
 0x211   :  { %1871 = vmatpush3.bf16.msra.mxu0 %v1953_v52 }
 0x2b4   :  { %v1836_v51 = vpop.f32.mrf.mxu0 }
 0x2b5   :  { %v682_v1 = vadd.f32 %v1836_v51, %v1628_v46 }
 0x2b6   :  { %v676_v2 = vpop.f32.mrf.mxu0 }
 0x2b7   :  { %v686_v11 = vmul.f32 %v682_v1, %v682_v1  ;;  %v677_v28 = vadd.f32 %v1628_v46, %v676_v2  ;;  %v1645_v46 = vld [vmem:[%s2761_s10] ss:$0 sm:$0xff]  ;;  %v878_v2 = vrot.slane %v2516_v49, 3 }
 0x2b9   :  { %v688_v22 = vmul.f32 %v686_v11, %v682_v1  ;;  %v685_v37 = vmul.f32 %v677_v28, %v677_v28  ;;  %v893_v11 = vrot.slane %v2519_v44, 4 }
 0x2bb   :  { %v690_v61 = vmul.f32 0.044715, %v688_v22  ;;  %v687_v38 = vmul.f32 %v685_v37, %v677_v28  ;;  %v983_v22 = vmul.f32 0.0, %v2522_v55 }
 0x2bd   :  { %v692_v54 = vadd.f32 %v690_v61, %v682_v1  ;;  %v689_v3 = vmul.f32 0.044715, %v687_v38  ;;  %v998_v38 = vmul.f32 0.0, %v2531_v16 }
 0x2bf   :  { %v694_v12 = vmul.f32 0.7978846, %v692_v54  ;;  %v691_v5 = vadd.f32 %v689_v3, %v677_v28  ;;  %v934_v54 = vrot.slane %v2535_v35, 7  ;;  %v2563_v3 = vrot.slane %v953_v39, 1 }
 0x2c1   :  { %1974 = vtanh.f32 %v694_v12  ;;  %v693_v62 = vmul.f32 0.7978846, %v691_v5  ;;  %v2565_v12 = vrot.slane %v968_v18, 2 }
 0x2c3   :  { %1976 = vtanh.f32 %v693_v62 }
 0x2ce   :  { %v1975_v40 = vpop.eup %1974 }
 0x2cf   :  { %v698_v63 = vadd.f32 1.0, %v1975_v40 }
 0x2d0   :  { %v1977_v7 = vpop.eup %1976 }
 0x2d1   :  { %v697_v45 = vadd.f32 1.0, %v1977_v7  ;;  %v700_v57 = vmul.f32 0.5, %v698_v63 }
 0x2d3   :  { %v699_v17 = vmul.f32 0.5, %v697_v45  ;;  %v702_v0 = vmul.f32 %v700_v57, %v682_v1  ;;  %v848_v1 = vrot.slane %v2512_v42, 1  ;;  %v2579_v45 = vrot.slane %v983_v22, 3 }
 0x2d5   :  { %v701_v29 = vmul.f32 %v699_v17, %v677_v28  ;;  %v918_v28 = vrot.slane %v1646_v48, %v248_v36 }
 0x2d7   :  { %1853 = vmatprep.mubr.f32.mxu1 %v701_v29 }
 0x2d8   :  { %1854 = vmatmul.mubr.f32.vlgmr.msra.gmra.mxu1 %v702_v0  ;;  %v2582_v0 = vrot.slane %v998_v38, 4 }
 0x398   :  { %v1855_v20 = vpop.f32.mrf.mxu1 }
 0x399   :  { %v811_v9 = vadd.f32 %v1855_v20, %v2272_v60  ;;  %v2546_v60 = vrot.slane %v1647_v23, %v2173_v14 }
 0x39a   :  { %v801_v10 = vpop.f32.mrf.mxu1 }
 0x39b   :  { %v810_v51 = vadd.f32 %v801_v10, %v2267_v56  ;;  %v908_v56 = vrot.slane %v2528_v15, 5  ;;  %v2557_v61 = vmul.f32 0.0, %v2546_v60  ;;  %v2560_v14 = vadd.f32 %v1645_v46, %v811_v9 }
 0x39d   :  { %v2553_v37 = vadd.f32 %v1645_v46, %v810_v51  ;;  %v1008_v53 = vmul.f32 %v829_v47, %v2560_v14  ;;  %v1010_v41 = vmul.f32 %v843_v31, %v2560_v14  ;;  %v1018_v52 = vmul.f32 %v858_v24, %v2560_v14 }
 0x39e   :  { %v1026_v42 = vmul.f32 %v873_v25, %v2560_v14  ;;  %v1042_v9 = vmul.f32 %v2495_v50, %v2560_v14  ;;  %v1050_v18 = vmul.f32 %v918_v28, %v2560_v14 }
 0x39f   :  { %v831_v13 = vmul.f32 %v829_v47, %v2553_v37  ;;  %v845_v36 = vmul.f32 %v843_v31, %v2553_v37  ;;  %v860_v5 = vmul.f32 %v858_v24, %v2553_v37  ;;  %v875_v62 = vmul.f32 %v873_v25, %v2553_v37 }
 0x3a0   :  { %v890_v40 = vmul.f32 %v2491_v4, %v2553_v37  ;;  %v905_v63 = vmul.f32 %v2495_v50, %v2553_v37  ;;  %v2577_v7 = vmul.f32 %v2504_v8, %v2553_v37  ;;  %v919_v43 = vmul.f32 %v918_v28, %v2553_v37 }
 0x3a1   :  { %v839_v57 = vadd.f32 %v2500_v26, %v831_v13  ;;  %v849_v17 = vrot.slane %v845_v36, 1  ;;  %v864_v29 = vrot.slane %v860_v5, 2  ;;  %v879_v33 = vrot.slane %v875_v62, 3 }
 0x3a2   :  { %v894_v6 = vrot.slane %v890_v40, 4  ;;  %v909_v23 = vrot.slane %v905_v63, 5  ;;  %v933_v34 = vrot.slane %v2577_v7, 7  ;;  %v1034_v31 = vmul.f32 %v2491_v4, %v2560_v14 }
 0x3a3   :  { %v850_v30 = vsel %vm174_vm1, %v848_v1, %v849_v17  ;;  %v854_v58 = vadd.f32 %v849_v17, %v839_v57  ;;  %v865_v20 = vsel %vm190_vm2, %v863_v19, %v864_v29  ;;  %v880_v24 = vsel %vm206_vm3, %v878_v2, %v879_v33 }
 0x3a4   :  { %v853_v48 = vadd.f32 %v850_v30, %v2525_v21  ;;  %v921_v39 = vrot.slane %v919_v43, 6  ;;  %v895_v46 = vsel %vm222_vm4, %v893_v11, %v894_v6  ;;  %v1009_v51 = vadd.f32 %v2500_v26, %v1008_v53 }
 0x3a5   :  { %v869_v47 = vadd.f32 %v864_v29, %v854_v58  ;;  %v1012_v22 = vrot.slane %v1010_v41, 1  ;;  %v910_v50 = vsel %vm238_vm5, %v908_v56, %v909_v23  ;;  %v935_v38 = vsel %vm264_vm6, %v933_v34, %v934_v54 }
 0x3a6   :  { %v868_v10 = vadd.f32 %v865_v20, %v853_v48  ;;  %v1020_v13 = vrot.slane %v1018_v52, 2  ;;  %v944_v28 = vmul.f32 %v2546_v60, %v2553_v37  ;;  %v952_v5 = vmul.f32 %v2507_v32, %v2553_v37 }
 0x3a7   :  { %v884_v25 = vadd.f32 %v879_v33, %v869_v47  ;;  %v1013_v26 = vsel %vm174_vm1, %v848_v1, %v1012_v22  ;;  %v967_v40 = vmul.f32 %v2510_v27, %v2553_v37  ;;  %v982_v63 = vmul.f32 %v2522_v55, %v2553_v37 }
 0x3a8   :  { %v883_v4 = vadd.f32 %v880_v24, %v868_v10  ;;  %v1016_v7 = vadd.f32 %v1013_v26, %v2525_v21  ;;  %v1017_v17 = vadd.f32 %v1012_v22, %v1009_v51  ;;  %v1021_v29 = vsel %vm190_vm2, %v863_v19, %v1020_v13 }
 0x3a9   :  { %v899_v36 = vadd.f32 %v894_v6, %v884_v25  ;;  %v1028_v33 = vrot.slane %v1026_v42, 3  ;;  %v997_v1 = vmul.f32 %v2531_v16, %v2553_v37  ;;  %v1036_v41 = vrot.slane %v1034_v31, 4 }
 0x3aa   :  { %v898_v62 = vadd.f32 %v895_v46, %v883_v4  ;;  %v1024_v53 = vadd.f32 %v1021_v29, %v1016_v7  ;;  %v1025_v58 = vadd.f32 %v1020_v13, %v1017_v17  ;;  %v1044_v21 = vrot.slane %v1042_v9, 5 }
 0x3ab   :  { %v914_v57 = vadd.f32 %v909_v23, %v899_v36  ;;  %v1029_v6 = vsel %vm206_vm3, %v878_v2, %v1028_v33  ;;  %v956_v48 = vrot.slane %v952_v5, 1  ;;  %v971_v23 = vrot.slane %v967_v40, 2 }
 0x3ac   :  { %v913_v43 = vadd.f32 %v910_v50, %v898_v62  ;;  %v1032_v59 = vadd.f32 %v1029_v6, %v1024_v53  ;;  %v1033_v19 = vadd.f32 %v1028_v33, %v1025_v58  ;;  %v1037_v42 = vsel %vm222_vm4, %v893_v11, %v1036_v41 }
 0x3ad   :  { %v924_v30 = vadd.f32 %v921_v39, %v914_v57  ;;  %v1056_v47 = vmul.f32 %v2504_v8, %v2560_v14  ;;  %v986_v10 = vrot.slane %v982_v63, 3  ;;  %v1001_v24 = vrot.slane %v997_v1, 4 }
 0x3ae   :  { %v923_v52 = vadd.f32 %v921_v39, %v913_v43  ;;  %v1040_v49 = vadd.f32 %v1037_v42, %v1032_v59  ;;  %v1041_v9 = vadd.f32 %v1036_v41, %v1033_v19  ;;  %v1045_v39 = vsel %vm238_vm5, %v908_v56, %v1044_v21 }
 0x3af   :  { %v939_v20 = vadd.f32 %v935_v38, %v924_v30  ;;  %v1067_v25 = vmul.f32 %v2507_v32, %v2560_v14  ;;  %v1052_v11 = vrot.slane %v1050_v18, 6  ;;  %v1058_v51 = vrot.slane %v1056_v47, 7  ;;  %v1955_v47 = vld [vmem:[%s2758_s7 + $0x70] sm:$0xff]  }
 0x3b0   :  { %v938_v31 = vadd.f32 %v933_v34, %v923_v52  ;;  %v1048_v46 = vadd.f32 %v1045_v39, %v1040_v49  ;;  %v958_v8 = vsel %vm174_vm1, %v956_v48, %v2563_v3  ;;  %v1049_v22 = vadd.f32 %v1044_v21, %v1041_v9  ;;  %v1961_v49 = vld [vmem:[%s2758_s7 + $0x40] sm:$0xff]  }
 0x3b1   :  { %v947_v2 = vadd.f32 %v2557_v61, %v939_v20  ;;  %v1074_v4 = vmul.f32 %v2510_v27, %v2560_v14  ;;  %v973_v15 = vsel %vm190_vm2, %v971_v23, %v2565_v12  ;;  %v988_v32 = vsel %vm206_vm3, %v986_v10, %v2579_v45  ;;  %v1959_v10 = vld [vmem:[%s2758_s7 + $0x50] sm:$0xff]  }
 0x3b2   :  { %v946_v44 = vadd.f32 %v944_v28, %v938_v31  ;;  %v1054_v56 = vadd.f32 %v1052_v11, %v1048_v46  ;;  %v1055_v38 = vadd.f32 %v1052_v11, %v1049_v22  ;;  %v1069_v13 = vrot.slane %v1067_v25, 1  ;;  %v1958_v31 = vld [vmem:[%s2758_s7 + $0x58] sm:$0xff]  }
 0x3b3   :  { %v962_v34 = vadd.f32 %v2563_v3, %v947_v2  ;;  %v1081_v36 = vmul.f32 %v2522_v55, %v2560_v14  ;;  %v1059_v27 = vsel %vm264_vm6, %v1058_v51, %v934_v54  ;;  %v1064_v26 = vmul.f32 %v2546_v60, %v2560_v14  ;;  %v1667_v2 = vld [vmem:[%s2757_s6 + $0x1] ss:$0 sm:$0xff] }
 0x3b4   :  { %v961_v50 = vadd.f32 %v958_v8, %v946_v44  ;;  %v1062_v5 = vadd.f32 %v1058_v51, %v1054_v56  ;;  %v1063_v40 = vadd.f32 %v1059_v27, %v1055_v38  ;;  %v1076_v63 = vrot.slane %v1074_v4, 2 }
 0x3b5   :  { %v977_v18 = vadd.f32 %v2565_v12, %v962_v34  ;;  %v1088_v7 = vmul.f32 %v2531_v16, %v2560_v14  ;;  %v1003_v55 = vsel %vm222_vm4, %v1001_v24, %v2582_v0  ;;  %v1070_v29 = vsel %vm174_vm1, %v1069_v13, %v2563_v3  ;;  %v1960_v24 = vld [vmem:[%s2758_s7 + $0x48] sm:$0xff]  }
 0x3b6   :  { %v976_v28 = vadd.f32 %v973_v15, %v961_v50  ;;  %v1065_v17 = vadd.f32 %v1064_v26, %v1062_v5  ;;  %v1066_v54 = vadd.f32 %v1063_v40, %v2557_v61  ;;  %v1083_v60 = vrot.slane %v1081_v36, 3  ;;  %v1962_v26 = vld [vmem:[%s2760_s9 + $0x78] sm:$0xff]   ;;  %v1964_v40 = vld [vmem:[%s2760_s9 + $0x68] sm:$0xff]  }
 0x3b7   :  { %v992_v62 = vadd.f32 %v2579_v45, %v977_v18  ;;  %v1077_v16 = vsel %vm190_vm2, %v1076_v63, %v2565_v12  ;;  %v1090_v41 = vrot.slane %v1088_v7, 4  ;;  %1894 = vmatprep.subr.bf16.mxu0 %v1962_v26  ;;  %v1965_v63 = vld [vmem:[%s2760_s9 + $0x60] sm:$0xff]   ;;  %v1966_v7 = vld [vmem:[%s2760_s9 + $0x58] sm:$0xff]  }
 0x3b8   :  { %v991_v57 = vadd.f32 %v988_v32, %v976_v28  ;;  %v1072_v43 = vadd.f32 %v1070_v29, %v1065_v17  ;;  %v1073_v53 = vadd.f32 %v1066_v54, %v2563_v3  ;;  %v1084_v61 = vsel %vm206_vm3, %v1083_v60, %v2579_v45  ;;  %v1969_v17 = vld [vmem:[%s2760_s9 + $0x40] sm:$0xff]  }
 0x3b9   :  { %v1007_v35 = vadd.f32 %v2582_v0, %v992_v62  ;;  %v1091_v3 = vsel %vm222_vm4, %v1090_v41, %v2582_v0  ;;  %v1963_v62 = vld [vmem:[%s2760_s9 + $0x70] sm:$0xff]  }
 0x3ba   :  { %v1006_v33 = vadd.f32 %v1003_v55, %v991_v57  ;;  %v1079_v58 = vadd.f32 %v1077_v16, %v1072_v43  ;;  %v1080_v6 = vadd.f32 %v1073_v53, %v2565_v12  ;;  %v1954_v12 = vld [vmem:[%s2758_s7 + $0x78] sm:$0xff]   ;;  %v1967_v57 = vld [vmem:[%s2760_s9 + $0x50] sm:$0xff]   ;;  %v1968_v55 = vld [vmem:[%s2760_s9 + $0x48] sm:$0xff]  }
 0x3bb   :  { %v1098_v1 = vrot.slane %v1007_v35, 2  ;;  %1875 = vmatprep.subr.bf16.mxu1 %v1954_v12  ;;  %v1693_v35 = vld [vmem:[%s2759_s8 + $0x1] ss:$0 sm:$0xff] }
 0x3bc   :  { %v1097_v30 = vrot.slane %v1006_v33, 2  ;;  %v1086_v52 = vadd.f32 %v1084_v61, %v1079_v58  ;;  %v1087_v48 = vadd.f32 %v1080_v6, %v2579_v45  ;;  %1876 = vmatpush3.bf16.msra.mxu1 %v1954_v12  ;;  %v1956_v45 = vld [vmem:[%s2758_s7 + $0x68] sm:$0xff]  }
 0x3bd   :  { %1877 = vmatprep.subr.bf16.mxu1 %v1955_v47 }
 0x3be   :  { %v1099_v21 = vsel %vm190_vm2, %v1097_v30, %v1098_v1  ;;  %v1093_v23 = vadd.f32 %v1091_v3, %v1086_v52  ;;  %v1094_v59 = vadd.f32 %v1087_v48, %v2582_v0  ;;  %v1957_v0 = vld [vmem:[%s2758_s7 + $0x60] sm:$0xff]  }
 0x3bf   :  { %1872 = vmatprep.mubr.f32.mxu0 %v1099_v21 }
 0x3c0   :  { %v1103_v20 = vrot.slane %v1093_v23, 2  ;;  %v1104_v19 = vrot.slane %v1094_v59, 2  ;;  %1878 = vmatpush3.bf16.msra.mxu1 %v1955_v47  ;;  %v1727_v47 = vld [vmem:[%s2761_s10 + $0x1] ss:$0 sm:$0xff] }
 0x3c1   :  { %1879 = vmatprep.subr.bf16.mxu1 %v1956_v45 }
 0x3c2   :  { %v1105_v42 = vsel %vm190_vm2, %v1103_v20, %v1104_v19 }
 0x3c3   :  { %1873 = vmatmul.mubr.f32.vlgmr.msra.gmra.mxu0 %v1105_v42 }
 0x3c4   :  { %1880 = vmatpush3.bf16.msra.mxu1 %v1956_v45  ;;  %1895 = vmatpush3.bf16.msra.mxu0 %v1962_v26 }
 0x3c5   :  { %1881 = vmatprep.subr.bf16.mxu1 %v1957_v0  ;;  %1896 = vmatprep.subr.bf16.mxu0 %v1963_v62 }
 0x3c8   :  { %1882 = vmatpush3.bf16.msra.mxu1 %v1957_v0  ;;  %1897 = vmatpush3.bf16.msra.mxu0 %v1963_v62 }
 0x3c9   :  { %1883 = vmatprep.subr.bf16.mxu1 %v1958_v31  ;;  %1898 = vmatprep.subr.bf16.mxu0 %v1964_v40 }
 0x3cc   :  { %1884 = vmatpush3.bf16.msra.mxu1 %v1958_v31  ;;  %1899 = vmatpush3.bf16.msra.mxu0 %v1964_v40 }
 0x3cd   :  { %1885 = vmatprep.subr.bf16.mxu1 %v1959_v10  ;;  %1900 = vmatprep.subr.bf16.mxu0 %v1965_v63 }
 0x3d0   :  { %1886 = vmatpush3.bf16.msra.mxu1 %v1959_v10  ;;  %1901 = vmatpush3.bf16.msra.mxu0 %v1965_v63 }
 0x3d1   :  { %1887 = vmatprep.subr.bf16.mxu1 %v1960_v24  ;;  %1902 = vmatprep.subr.bf16.mxu0 %v1966_v7 }
 0x3d4   :  { %1888 = vmatpush3.bf16.msra.mxu1 %v1960_v24  ;;  %1903 = vmatpush3.bf16.msra.mxu0 %v1966_v7 }
 0x3d5   :  { %1889 = vmatprep.subr.bf16.mxu1 %v1961_v49  ;;  %1904 = vmatprep.subr.bf16.mxu0 %v1967_v57 }
 0x3d8   :  { %1890 = vmatpush3.bf16.msra.mxu1 %v1961_v49  ;;  %1905 = vmatpush3.bf16.msra.mxu0 %v1967_v57 }
 0x3d9   :  { %1906 = vmatprep.subr.bf16.mxu0 %v1968_v55 }
 0x3dc   :  { %1907 = vmatpush3.bf16.msra.mxu0 %v1968_v55 }
 0x3dd   :  { %1908 = vmatprep.subr.bf16.mxu0 %v1969_v17 }
 0x3e0   :  { %1909 = vmatpush3.bf16.msra.mxu0 %v1969_v17 }
 0x483   :  { %v1874_v9 = vpop.f32.mrf.mxu0 }
 0x484   :  { %v1220_v39 = vadd.f32 %v1874_v9, %v1667_v2 }
 0x485   :  { %v1214_v25 = vpop.f32.mrf.mxu0 }
 0x486   :  { %v1224_v44 = vmul.f32 %v1220_v39, %v1220_v39  ;;  %v1215_v46 = vadd.f32 %v1667_v2, %v1214_v25 }
 0x488   :  { %v1226_v11 = vmul.f32 %v1224_v44, %v1220_v39  ;;  %v1223_v51 = vmul.f32 %v1215_v46, %v1215_v46 }
 0x48a   :  { %v1228_v8 = vmul.f32 0.044715, %v1226_v11  ;;  %v1225_v34 = vmul.f32 %v1223_v51, %v1215_v46 }
 0x48c   :  { %v1230_v22 = vadd.f32 %v1228_v8, %v1220_v39  ;;  %v1227_v4 = vmul.f32 0.044715, %v1225_v34 }
 0x48e   :  { %v1232_v50 = vmul.f32 0.7978846, %v1230_v22  ;;  %v1229_v15 = vadd.f32 %v1227_v4, %v1215_v46 }
 0x490   :  { %1978 = vtanh.f32 %v1232_v50  ;;  %v1231_v32 = vmul.f32 0.7978846, %v1229_v15  ;;  %v1572_v15 = vld [vmem:[#allocation5 + $0x8] sm:$0xff] }
 0x492   :  { %1980 = vtanh.f32 %v1231_v32 }
 0x49d   :  { %v1979_v56 = vpop.eup %1978 }
 0x49e   :  { %v1236_v18 = vadd.f32 1.0, %v1979_v56 }
 0x49f   :  { %v1981_v38 = vpop.eup %1980 }
 0x4a0   :  { %v1235_v13 = vadd.f32 1.0, %v1981_v38  ;;  %v1238_v36 = vmul.f32 0.5, %v1236_v18 }
 0x4a2   :  { %v1237_v28 = vmul.f32 0.5, %v1235_v13  ;;  %v1240_v5 = vmul.f32 %v1238_v36, %v1220_v39 }
 0x4a4   :  { %v1239_v27 = vmul.f32 %v1237_v28, %v1215_v46 }
 0x4a6   :  { %1891 = vmatprep.mubr.f32.mxu1 %v1239_v27  ;;  %v1584_v27 = vld [vmem:[#allocation5 + $0x10] sm:$0xff] }
 0x4a7   :  { %1892 = vmatmul.mubr.f32.vlgmr.msra.gmra.mxu1 %v1240_v5 }
 0x567   :  { %v1893_v54 = vpop.f32.mrf.mxu1 }
 0x568   :  { %v1354_v29 = vadd.f32 %v1893_v54, %v1693_v35 }
 0x569   :  { %v1348_v60 = vpop.f32.mrf.mxu1 }
 0x56a   :  { %v1358_v33 = vmul.f32 %v1354_v29, %v1354_v29  ;;  %v1349_v43 = vadd.f32 %v1693_v35, %v1348_v60 }
 0x56c   :  { %v1360_v1 = vmul.f32 %v1358_v33, %v1354_v29  ;;  %v1357_v53 = vmul.f32 %v1349_v43, %v1349_v43 }
 0x56e   :  { %v1362_v16 = vmul.f32 0.044715, %v1360_v1  ;;  %v1359_v41 = vmul.f32 %v1357_v53, %v1349_v43 }
 0x570   :  { %v1364_v30 = vadd.f32 %v1362_v16, %v1354_v29  ;;  %v1361_v58 = vmul.f32 0.044715, %v1359_v41 }
 0x572   :  { %v1366_v6 = vmul.f32 0.7978846, %v1364_v30  ;;  %v1363_v61 = vadd.f32 %v1361_v58, %v1349_v43 }
 0x574   :  { %1982 = vtanh.f32 %v1366_v6  ;;  %v1365_v21 = vmul.f32 0.7978846, %v1363_v61 }
 0x576   :  { %1984 = vtanh.f32 %v1365_v21 }
 0x581   :  { %v1983_v52 = vpop.eup %1982 }
 0x582   :  { %v1370_v48 = vadd.f32 1.0, %v1983_v52 }
 0x583   :  { %v1985_v3 = vpop.eup %1984 }
 0x584   :  { %v1369_v23 = vadd.f32 1.0, %v1985_v3  ;;  %v1372_v59 = vmul.f32 0.5, %v1370_v48 }
 0x586   :  { %v1371_v20 = vmul.f32 0.5, %v1369_v23  ;;  %v1374_v42 = vmul.f32 %v1372_v59, %v1354_v29 }
 0x588   :  { %v1373_v19 = vmul.f32 %v1371_v20, %v1349_v43  ;;  %v2766_v43 = vlaneseq }
 0x58a   :  { %1910 = vmatprep.mubr.f32.mxu0 %v1373_v19  ;;  %v1514_v1 = vand.u32 127, %v2766_v43 }
 0x58b   :  { %1911 = vmatmul.mubr.f32.vlgmr.msra.gmra.mxu0 %v1374_v42 }
 0x58c   :  { %vm1526_vm7 = vcmp.eq.s32.totalorder %v1514_v1, 0  ;;  %vm1540_vm8 = vcmp.eq.s32.totalorder %v1514_v1, 1  ;;  %vm1554_vm9 = vcmp.eq.s32.totalorder %v1514_v1, 2 }
 0x64b   :  { %v1912_v12 = vpop.f32.mrf.mxu0 }
 0x64c   :  { %v1484_v45 = vadd.f32 %v1912_v12, %v2560_v14 }
 0x64d   :  { %v1474_v0 = vpop.f32.mrf.mxu0 }
 0x64e   :  { %v1494_v31 = vadd.f32 %v1727_v47, %v1484_v45  ;;  %v1483_v10 = vadd.f32 %v1474_v0, %v2553_v37  ;;  %v1560_v37 = vld [vmem:[#allocation5] sm:$0xff]  ;;  %v1559_v0 = vld [vmem:[%s2763_s12] sm:$0x1] }
 0x650   :  { %v1496_v24 = vmul.f32 %v1494_v31, %v1494_v31  ;;  %v1493_v49 = vadd.f32 %v1727_v47, %v1483_v10 }
 0x652   :  { %v1498_v2 = vmul.f32 %v1496_v24, %v1494_v31  ;;  %v1495_v9 = vmul.f32 %v1493_v49, %v1493_v49 }
 0x654   :  { %v1500_v39 = vmul.f32 0.044715, %v1498_v2  ;;  %v1497_v25 = vmul.f32 %v1495_v9, %v1493_v49  ;;  %v1515_v2 = vld [vmem:[%s2763_s12] sm:$0x1]  ;;  %s2030_s12 = scalar_lea.vmem %s1604_s17, 32 }
 0x655   :  { %p2031_p10 = scmp.ne.s32.totalorder %s1604_s17, %s2030_s12  ;;  %p2036_p12 = scmp.lt.s32.totalorder %s2030_s12, %s2030_s12 }
 0x656   :  { %v1502_v44 = vadd.f32 %v1500_v39, %v1494_v31  ;;  %v1499_v46 = vmul.f32 0.044715, %v1497_v25 }
 0x657   :  { %p2037_p13 = por %p2036_p12, %p2035_p11 }
 0x658   :  { %v1501_v11 = vadd.f32 %v1499_v46, %v1493_v49  ;;  %v1504_v51 = vmul.f32 0.7978846, %v1502_v44 }
 0x659   :  { %p2038_p0 = pnand %p2037_p13, %p2031_p10 }
 0x65a   :  { %v1503_v8 = vmul.f32 0.7978846, %v1501_v11  ;;  %1986 = vtanh.f32 %v1504_v51 }
 0x65c   :  { %1988 = vtanh.f32 %v1503_v8 }
 0x667   :  { %v1987_v34 = vpop.eup %1986 }
 0x668   :  { %v1508_v22 = vadd.f32 1.0, %v1987_v34 }
 0x669   :  { %v1989_v14 = vpop.eup %1988 }
 0x66a   :  { %v1510_v4 = vmul.f32 0.5, %v1508_v22  ;;  %v1507_v50 = vadd.f32 1.0, %v1989_v14 }
 0x66c   :  { %v1512_v32 = vmul.f32 %v1510_v4, %v1494_v31  ;;  %v1509_v56 = vmul.f32 0.5, %v1507_v50 }
 0x66e   :  { %v1573_v18 = vmul.f32 %v1572_v15, %v1512_v32  ;;  %v1561_v38 = vmul.f32 %v1560_v37, %v1512_v32  ;;  %v1511_v13 = vmul.f32 %v1509_v56, %v1493_v49  ;;  %v1585_v5 = vmul.f32 %v1584_v27, %v1512_v32 }
 0x670   :  { %1574 = vadd.xlane.f32.xlu1 %v1573_v18  ;;  %1562 = vadd.xlane.f32.xlu0 %v1561_v38  ;;  %v1531_v36 = vmul.f32 %v1572_v15, %v1511_v13  ;;  %v1517_v28 = vmul.f32 %v1560_v37, %v1511_v13  ;;  %v1545_v26 = vmul.f32 %v1584_v27, %v1511_v13 }
 0x674   :  { %1532 = vadd.xlane.f32.xlu1 %v1531_v36  ;;  %1518 = vadd.xlane.f32.xlu0 %v1517_v28 }
 0x678   :  { %1586 = vadd.xlane.f32.xlu1 %v1585_v5  ;;  %1546 = vadd.xlane.f32.xlu0 %v1545_v26 }
 0x6f9   :  { %v1575_v62 = vpop.xlane.xlu1 %1574  ;;  %v1563_v40 = vpop.xlane.xlu0 %1562 }
 0x6fa   :  { %v1576_v63 = vrot.slane %v1575_v62, 4  ;;  %v1564_v7 = vrot.slane %v1563_v40, 4 }
 0x6fc   :  { %v1577_v57 = vadd.f32 %v1576_v63, %v1575_v62  ;;  %v1565_v55 = vadd.f32 %v1564_v7, %v1563_v40 }
 0x6fd   :  { %v1533_v17 = vpop.xlane.xlu1 %1532  ;;  %v1519_v35 = vpop.xlane.xlu0 %1518 }
 0x6fe   :  { %v1578_v54 = vrot.slane %v1577_v57, 2  ;;  %v1566_v29 = vrot.slane %v1565_v55, 2  ;;  %v1534_v60 = vrot.slane %v1533_v17, 4  ;;  %v1520_v33 = vrot.slane %v1519_v35, 4 }
 0x700   :  { %v1567_v53 = vadd.f32 %v1566_v29, %v1565_v55  ;;  %v1535_v16 = vadd.f32 %v1534_v60, %v1533_v17  ;;  %v1521_v41 = vadd.f32 %v1520_v33, %v1519_v35  ;;  %v1579_v30 = vadd.f32 %v1578_v54, %v1577_v57 }
 0x701   :  { %v1587_v58 = vpop.xlane.xlu1 %1586  ;;  %v1547_v6 = vpop.xlane.xlu0 %1546 }
 0x702   :  { %v1568_v61 = vrot.slane %v1567_v53, 1  ;;  %v1536_v21 = vrot.slane %v1535_v16, 2  ;;  %v1522_v52 = vrot.slane %v1521_v41, 2  ;;  %v1588_v48 = vrot.slane %v1587_v58, 4 }
 0x703   :  { %v1548_v3 = vrot.slane %v1547_v6, 4  ;;  %v1580_v19 = vrot.slane %v1579_v30, 1 }
 0x704   :  { %v1569_v23 = vadd.f32 %v1568_v61, %v1567_v53  ;;  %v1537_v59 = vadd.f32 %v1536_v21, %v1535_v16  ;;  %v1523_v20 = vadd.f32 %v1522_v52, %v1521_v41  ;;  %v1589_v42 = vadd.f32 %v1588_v48, %v1587_v58 }
 0x705   :  { %v1549_v12 = vadd.f32 %v1548_v3, %v1547_v6  ;;  %v1581_v39 = vadd.f32 %v1580_v19, %v1579_v30 }
 0x706   :  { %v1538_v47 = vrot.slane %v1537_v59, 1  ;;  %v1524_v45 = vrot.slane %v1523_v20, 1  ;;  %v1570_v31 = vsel %vm1526_vm7, %v1569_v23, 0.0  ;;  %v1590_v10 = vrot.slane %v1589_v42, 2 }
 0x707   :  { %v1550_v24 = vrot.slane %v1549_v12, 2  ;;  %v1571_v46 = vadd.f32 %v1570_v31, %v1559_v0  ;;  %v1582_v14 = vsel %vm1540_vm8, %v1581_v39, 0.0 }
 0x708   :  { %v1539_v49 = vadd.f32 %v1538_v47, %v1537_v59  ;;  %v1525_v9 = vadd.f32 %v1524_v45, %v1523_v20  ;;  %v1591_v25 = vadd.f32 %v1590_v10, %v1589_v42 }
 0x709   :  { %v1551_v44 = vadd.f32 %v1550_v24, %v1549_v12  ;;  %v1583_v37 = vadd.f32 %v1582_v14, %v1571_v46 }
 0x70a   :  { %v1527_v11 = vsel %vm1526_vm7, %v1525_v9, 0.0  ;;  %v1592_v8 = vrot.slane %v1591_v25, 1  ;;  %v1541_v22 = vsel %vm1540_vm8, %v1539_v49, 0.0 }
 0x70b   :  { %v1528_v51 = vadd.f32 %v1527_v11, %v1515_v2  ;;  %v1552_v34 = vrot.slane %v1551_v44, 1 }
 0x70c   :  { %v1593_v4 = vadd.f32 %v1592_v8, %v1591_v25 }
 0x70d   :  { %v1542_v50 = vadd.f32 %v1541_v22, %v1528_v51  ;;  %v1553_v15 = vadd.f32 %v1552_v34, %v1551_v44 }
 0x70e   :  { %v1594_v32 = vsel %vm1554_vm9, %v1593_v4, 0.0 }
 0x70f   :  { %v1555_v56 = vsel %vm1554_vm9, %v1553_v15, 0.0  ;;  %v1595_v18 = vadd.f32 %v1594_v32, %v1583_v37 }
 0x710   :  { %v1556_v38 = vadd.f32 %v1555_v56, %v1542_v50 }
 0x711   :  { %1596 = vst.msk [vmem:[#allocation7 + $0x1] sm:$0x1] %vm1557_vm10, %v1595_v18 }
 0x712   :  { %1558 = vst.msk [vmem:[#allocation7] sm:$0x1] %vm1557_vm10, %v1556_v38 }
 0x713   :  { %2041 = shalt.err (!%p2038_p0)
}
 0x714   :  { %1606 = dma.vmem_to_hbm [thread:$0]  %s1604_s17, 32, %s2764_s13, [#allocation4]  }
 0x715   :  { %2054 = dma.done.wait [#allocation4], 32  }
 0x716   :  { %2055 = vsyncadd [#allocation4], 4294967264 }
 0x717   :  { %1610 = vsyncpa [#allocation3], 1 }
 0x718   :  { %1611 = vsyncpa [#allocation6], 1 }
 0x719   :  { %1612 = vsyncpa [#allocation4], 1 }

</bundles_post_ra>
